<compile_context>
chip_gen: v7x
topology: tpu7x:2x2x1
jax: 0.10.0
libtpu: 0.0.40
codegen_flags: <defaults>
</compile_context>

<pallas_src>
import numpy as np
import jax
import jax.numpy as jnp
from jax import lax
from jax.experimental import pallas as pl
from jax.experimental.pallas import tpu as pltpu

# ---- model configuration (small synthetic sizes, c2 = 2*c1 as in SGN) ----
BS = 2
NUM_POINT = 8          # V
SEG = 8                # T (= step)
IN_CH = 3              # xyz
C1, C2, C3, C4 = 16, 32, 64, 128
NUM_CLASS = 10
BN_EPS = 1e-5

T, V = SEG, NUM_POINT
TV = T * V             # 64 rows per sample (frames x joints)
XW = 16                # lane-padded width of the [pos|vel] input slab
YPAD = 128             # lane-dense padded logits width

# ---- bf16 weight slab layout (rows, all offsets multiples of 16) ----
OFF_EMB1, OFF_EMB2, OFF_G12 = 0, 16, 48
OFF_GCN1, OFF_GCN2, OFF_GCN3 = 80, 144, 208
OFF_LOC1, OFF_LOC2, OFF_FC = 336, 528, 592
W_ROWS = 720

# ---- f32 constants slab layout (rows) ----
R_BEMB1, R_BEMB2, R_BG12 = 0, 1, 2
R_GCN1, R_GCN2, R_GCN3 = 3, 6, 9          # each: fused bias, bn scale, bn shift
R_LOCB1, R_LOCS1, R_LOCSH1 = 12, 13, 14
R_LOCB2, R_LOCS2, R_LOCSH2 = 15, 16, 17
R_FCB = 18
R_SPA, R_TEM, R_MASK = 24, 88, 96
C_ROWS = 160


def _relu(v):
    return jnp.maximum(v, 0.0)


# ---------------------------------------------------------------------------
# Pallas kernel: one grid step = one batch sample (64 rows).
# ---------------------------------------------------------------------------
def sgn_kernel(x6_ref, w_ref, c_ref, y_ref, g_ref):
    f32, bf16 = jnp.float32, jnp.bfloat16

    def crow(r, width):                      # (1, width) f32 constant row
        return c_ref[r:r + 1, 0:width]

    def mm(a_bf, w_bf):                      # bf16 operands, f32 accumulation
        return jnp.dot(a_bf, w_bf, preferred_element_type=f32)

    x6 = x6_ref[0]                                            # (64, 16) bf16

    # --- position + velocity embedding (block-diagonal pos/vel weights) ---
    h = _relu(mm(x6, w_ref[OFF_EMB1:OFF_EMB1 + 16, 0:2 * C1]) + crow(R_BEMB1, 2 * C1))
    h = _relu(mm(h.astype(bf16), w_ref[OFF_EMB2:OFF_EMB2 + 2 * C1, 0:2 * C1])
              + crow(R_BEMB2, 2 * C1))
    dy1 = h[:, :C1] + h[:, C1:2 * C1]                         # (64, C1) f32

    # --- concat precomputed (batch-constant, pre-tiled) spatial embedding ---
    spa = c_ref[R_SPA:R_SPA + TV, 0:C1]                       # (64, C1) f32
    feat = jnp.concatenate([dy1, spa], axis=-1)               # (64, C2) f32
    feat_bf = feat.astype(bf16)

    # --- compute_g_spa: fused h1/h2 projection + block-diag masked softmax ---
    h12 = mm(feat_bf, w_ref[OFF_G12:OFF_G12 + C2, 0:2 * C3]) + crow(R_BG12, 2 * C3)
    h12_bf = h12.astype(bf16)                                 # cast once
    logits = lax.dot_general(h12_bf[:, :C3], h12_bf[:, C3:2 * C3],
                             (((1,), (1,)), ((), ())),
                             preferred_element_type=f32)      # (64, 64)
    logits = logits + c_ref[R_MASK:R_MASK + TV, 0:TV]         # additive -1e30 mask
    mx = jnp.max(logits, axis=-1, keepdims=True)              # (mask BEFORE max)
    e = jnp.exp(logits - mx)
    s = jnp.sum(e, axis=-1, keepdims=True)
    g = e * pl.reciprocal(s, approx=True)                     # (64, 64) f32
    g_bf = g.astype(bf16)                                     # cast once
    g_ref[0] = g

    # --- three gcn_spa blocks: ONE K-fused matmul each ---
    def gcn(xin_bf, off, krows, cout, rbase):
        agg = mm(g_bf, xin_bf)                                # (64, cin) f32
        cat = jnp.concatenate([agg.astype(bf16), xin_bf], axis=-1)   # (64, 2*cin)
        hh = mm(cat, w_ref[off:off + krows, 0:cout]) + crow(rbase, cout)
        return _relu(hh * crow(rbase + 1, cout) + crow(rbase + 2, cout))   # f32

    f1 = gcn(feat_bf, OFF_GCN1, 2 * C2, C2, R_GCN1)           # (64, C2)
    f2 = gcn(f1.astype(bf16), OFF_GCN2, 2 * C2, C3, R_GCN2)   # (64, C3)
    f3 = gcn(f2.astype(bf16), OFF_GCN3, 2 * C3, C3, R_GCN3)   # (64, C3)

    # --- max over joints (smp) + temporal embedding (constant over joints,
    #     so adding after the max is exact) ---
    ft = jnp.max(f3.reshape(T, V, C3), axis=1) + c_ref[R_TEM:R_TEM + T, 0:C3]  # (T, C3)

    # --- local temporal block: fused 3-tap conv (K=192) -> bn -> relu -> 1x1 ---
    zrow = jnp.zeros((1, C3), f32)
    prev = jnp.concatenate([zrow, ft[:T - 1]], axis=0)
    nxt = jnp.concatenate([ft[1:], zrow], axis=0)
    xcat = jnp.concatenate([prev, ft, nxt], axis=-1).astype(bf16)   # (T, 3*C3)
    h = mm(xcat, w_ref[OFF_LOC1:OFF_LOC1 + 3 * C3, 0:C3]) + crow(R_LOCB1, C3)
    h = _relu(h * crow(R_LOCS1, C3) + crow(R_LOCSH1, C3))           # (T, C3)
    h = mm(h.astype(bf16), w_ref[OFF_LOC2:OFF_LOC2 + C3, 0:C4]) + crow(R_LOCB2, C4)
    h = _relu(h * crow(R_LOCS2, C4) + crow(R_LOCSH2, C4))           # (T, C4)

    # --- global max over time (tmp) + padded FC head, full-tile store ---
    pooled = jnp.max(h, axis=0, keepdims=True)                      # (1, C4)
    y = mm(pooled.astype(bf16), w_ref[OFF_FC:OFF_FC + C4, 0:YPAD]) + crow(R_FCB, YPAD)
    y_ref[0] = jnp.broadcast_to(y, (8, YPAD))                       # unmasked (8,128) vst


# ---------------------------------------------------------------------------
# JAX wrapper: input prep + pallas_call + output unpacking.
# ---------------------------------------------------------------------------
@jax.jit
def sgn_pallas(x, wslab, cslab, bn_s6, bn_b6):
    """x: (BS, T, V, 3) f32.  Returns y (BS, NUM_CLASS), g (BS, T, V, V)."""
    f32 = jnp.float32
    dif = jnp.concatenate(
        [jnp.zeros((BS, 1, V, IN_CH), f32), x[:, 1:] - x[:, :-1]], axis=1)
    x6 = jnp.concatenate([x, dif], axis=-1) * bn_s6 + bn_b6          # (BS,T,V,6)
    x6 = jnp.pad(x6, ((0, 0), (0, 0), (0, 0), (0, XW - 2 * IN_CH)))  # lane pad
    x6 = x6.reshape(BS, TV, XW).astype(jnp.bfloat16)

    y_pad, g_blk = pl.pallas_call(
        sgn_kernel,
        out_shape=(jax.ShapeDtypeStruct((BS, 8, YPAD), jnp.float32),
                   jax.ShapeDtypeStruct((BS, TV, TV), jnp.float32)),
        grid_spec=pltpu.PrefetchScalarGridSpec(
            num_scalar_prefetch=0,
            grid=(BS,),
            in_specs=[pl.BlockSpec((1, TV, XW), lambda b: (b, 0, 0)),
                      pl.BlockSpec((W_ROWS, 128), lambda b: (0, 0)),
                      pl.BlockSpec((C_ROWS, 128), lambda b: (0, 0))],
            out_specs=[pl.BlockSpec((1, 8, YPAD), lambda b: (b, 0, 0)),
                       pl.BlockSpec((1, TV, TV), lambda b: (b, 0, 0))]),
        compiler_params=pltpu.CompilerParams(
            dimension_semantics=("parallel",)),
    )(x6, wslab, cslab)

    y = y_pad[:, 0, :NUM_CLASS]
    gf = g_blk.reshape(BS, T, V, T, V)
    idx = jnp.arange(T)
    g = jax.vmap(lambda a: a[idx, :, idx, :])(gf)                    # (BS,T,V,V)
    return y, g


# ---------------------------------------------------------------------------
# Straightforward per-sequence reference mirroring the PyTorch module.
# ---------------------------------------------------------------------------
def sgn_reference(x, p, *, bf16_matmul):
    f32 = jnp.float32

    def mm(a, b):
        if bf16_matmul:
            a, b = a.astype(jnp.bfloat16), b.astype(jnp.bfloat16)
        return jnp.dot(a, b, preferred_element_type=f32)

    def mmf(a, b):  # parameter-only constants: always f32 (as the module does)
        return jnp.dot(a, b, preferred_element_type=f32)

    def embed(v, bn_s, bn_b, w1, b1, w2, b2):
        v = v * bn_s[None] + bn_b[None]
        h = v.reshape(T * V, IN_CH)
        h = _relu(mm(h, w1) + b1)
        h = _relu(mm(h, w2) + b2)
        return h.reshape(T, V, C1)

    spa = _relu(mmf(jnp.eye(V, dtype=f32), p['spa_w1']) + p['spa_b1'])
    spa = _relu(mmf(spa, p['spa_w2']) + p['spa_b2'])            # (V, C1)
    tem = _relu(mmf(jnp.eye(T, dtype=f32), p['tem_w1']) + p['tem_b1'])
    tem = _relu(mmf(tem, p['tem_w2']) + p['tem_b2'])            # (T, C3)

    ys, gs = [], []
    for b in range(BS):
        xb = x[b]                                               # (T, V, 3)
        dif = jnp.concatenate(
            [jnp.zeros((1, V, IN_CH), f32), xb[1:] - xb[:-1]], axis=0)
        pos = embed(xb, p['pos_bn_s'], p['pos_bn_b'], p['pos_w1'], p['pos_b1'],
                    p['pos_w2'], p['pos_b2'])
        vel = embed(dif, p['vel_bn_s'], p['vel_bn_b'], p['vel_w1'], p['vel_b1'],
                    p['vel_w2'], p['vel_b2'])
        dy1 = pos + vel
        feat = jnp.concatenate(
            [dy1, jnp.broadcast_to(spa[None], (T, V, C1))], axis=-1)

        f2 = feat.reshape(T * V, C2)
        h1 = (mm(f2, p['g1_w']) + p['g1_b']).reshape(T, V, C3)
        h2 = (mm(f2, p['g2_w']) + p['g2_b']).reshape(T, V, C3)
        if bf16_matmul:
            h1, h2 = h1.astype(jnp.bfloat16), h2.astype(jnp.bfloat16)
        logits = jnp.einsum('tnc,tmc->tnm', h1, h2, preferred_element_type=f32)
        logits = logits - jnp.max(logits, axis=-1, keepdims=True)
        e = jnp.exp(logits)
        g = e / jnp.sum(e, axis=-1, keepdims=True)              # (T, V, V)

        def gcn(xin, cin, name):
            gc = g.astype(jnp.bfloat16) if bf16_matmul else g
            xc = xin.astype(jnp.bfloat16) if bf16_matmul else xin
            agg = jnp.einsum('tnm,tmc->tnc', gc, xc, preferred_element_type=f32)
            cout = p[name + '_w2'].shape[-1]
            h = (mm(agg.reshape(T * V, cin), p[name + '_w1']) + p[name + '_b1']
                 + mm(xin.reshape(T * V, cin), p[name + '_w2']) + p[name + '_b2'])
            h = _relu(h * p[name + '_bn_s'] + p[name + '_bn_sh'])
            return h.reshape(T, V, cout)

        feat = gcn(feat, C2, 'gcn1')
        feat = gcn(feat, C2, 'gcn2')
        feat = gcn(feat, C3, 'gcn3')

        feat = feat + tem[:, None, :]
        feat = jnp.max(feat, axis=1)                            # (T, C3)

        zp = jnp.zeros((1, C3), f32)
        xp = jnp.concatenate([zp, feat, zp], axis=0)            # (T+2, C3)
        h = (mm(xp[0:T], p['loc_w1'][0]) + mm(xp[1:T + 1], p['loc_w1'][1])
             + mm(xp[2:T + 2], p['loc_w1'][2]) + p['loc_b1'])
        h = _relu(h * p['loc_bn1_s'] + p['loc_bn1_sh'])
        h = mm(h, p['loc_w2']) + p['loc_b2']
        h = _relu(h * p['loc_bn2_s'] + p['loc_bn2_sh'])         # (T, C4)

        pooled = jnp.max(h, axis=0, keepdims=True)              # (1, C4)
        y = mm(pooled, p['fc_w']) + p['fc_b']                   # (1, NUM_CLASS)
        ys.append(y[0])
        gs.append(g)
    return jnp.stack(ys), jnp.stack(gs)


# ---------------------------------------------------------------------------
# Deterministic parameter construction (shapes of the PyTorch module; conv
# weights ~ N(0, sqrt(2/(k*out))) per SGN.init(); gcn*.w1 weights = 0; BN
# folded to affine with default running stats).
# ---------------------------------------------------------------------------
def build_raw_params(key):
    keys = iter(jax.random.split(key, 64))

    def nk():
        return next(keys)

    def conv_w(cin, cout, ksize=1):
        std = float(np.sqrt(2.0 / (ksize * cout)))
        w = jax.random.normal(nk(), (ksize, cin, cout), jnp.float32) * std
        return w[0] if ksize == 1 else w

    def conv_b(cin, cout, ksize=1):
        bound = 1.0 / float(np.sqrt(cin * ksize))
        return jax.random.uniform(nk(), (1, cout), jnp.float32, -bound, bound)

    def bn_fold(c):
        gamma = jnp.ones((c,), jnp.float32)
        beta = jnp.zeros((c,), jnp.float32)
        mean = jnp.zeros((c,), jnp.float32)
        var = jnp.ones((c,), jnp.float32)
        scale = gamma / jnp.sqrt(var + BN_EPS)
        return scale, beta - mean * scale

    def norm_data_fold():
        s, b = bn_fold(IN_CH * NUM_POINT)
        return (s.reshape(IN_CH, NUM_POINT).T,      # (V, 3) for [.., V, C] layout
                b.reshape(IN_CH, NUM_POINT).T)

    p = {}
    p['pos_bn_s'], p['pos_bn_b'] = norm_data_fold()
    p['pos_w1'], p['pos_b1'] = conv_w(IN_CH, C1), conv_b(IN_CH, C1)
    p['pos_w2'], p['pos_b2'] = conv_w(C1, C1), conv_b(C1, C1)
    p['vel_bn_s'], p['vel_bn_b'] = norm_data_fold()
    p['vel_w1'], p['vel_b1'] = conv_w(IN_CH, C1), conv_b(IN_CH, C1)
    p['vel_w2'], p['vel_b2'] = conv_w(C1, C1), conv_b(C1, C1)
    p['spa_w1'], p['spa_b1'] = conv_w(NUM_POINT, C1), conv_b(NUM_POINT, C1)
    p['spa_w2'], p['spa_b2'] = conv_w(C1, C1), conv_b(C1, C1)
    p['tem_w1'], p['tem_b1'] = conv_w(SEG, C1), conv_b(SEG, C1)
    p['tem_w2'], p['tem_b2'] = conv_w(C1, C3), conv_b(C1, C3)
    p['g1_w'], p['g1_b'] = conv_w(C2, C3), conv_b(C2, C3)
    p['g2_w'], p['g2_b'] = conv_w(C2, C3), conv_b(C2, C3)

    def gcn_params(name, cin, cout):
        p[name + '_w1'] = jnp.zeros((cin, cout), jnp.float32)  # SGN.init(): w1 = 0
        p[name + '_b1'] = conv_b(cin, cout)
        p[name + '_w2'] = conv_w(cin, cout)
        p[name + '_b2'] = conv_b(cin, cout)
        s, sh = bn_fold(cout)
        p[name + '_bn_s'], p[name + '_bn_sh'] = s[None], sh[None]

    gcn_params('gcn1', C2, C2)
    gcn_params('gcn2', C2, C3)
    gcn_params('gcn3', C3, C3)

    p['loc_w1'], p['loc_b1'] = conv_w(C3, C3, ksize=3), conv_b(C3, C3, ksize=3)
    s, sh = bn_fold(C3)
    p['loc_bn1_s'], p['loc_bn1_sh'] = s[None], sh[None]
    p['loc_w2'], p['loc_b2'] = conv_w(C3, C4), conv_b(C3, C4)
    s, sh = bn_fold(C4)
    p['loc_bn2_s'], p['loc_bn2_sh'] = s[None], sh[None]

    fc_bound = 1.0 / float(np.sqrt(C4))
    p['fc_w'] = jax.random.uniform(nk(), (C4, NUM_CLASS), jnp.float32,
                                   -fc_bound, fc_bound)
    p['fc_b'] = jax.random.uniform(nk(), (1, NUM_CLASS), jnp.float32,
                                   -fc_bound, fc_bound)
    return p


# ---------------------------------------------------------------------------
# Pack the 54 module tensors into: bf16 weight slab + f32 constants slab
# (+ input-BN affine used by the wrapper).
# ---------------------------------------------------------------------------
def pack_params(p):
    f32, bf16 = jnp.float32, jnp.bfloat16

    def blockdiag(a, b):
        (ra, ca), (rb, cb) = a.shape, b.shape
        out = jnp.zeros((ra + rb, ca + cb), f32)
        return out.at[:ra, :ca].set(a).at[ra:, ca:].set(b)

    def put(slab, r, w):
        rows, cols = w.shape
        return slab.at[r:r + rows, :cols].set(w)

    wslab = jnp.zeros((W_ROWS, 128), f32)
    wslab = put(wslab, OFF_EMB1, blockdiag(p['pos_w1'], p['vel_w1']))        # (6,32)
    wslab = put(wslab, OFF_EMB2, blockdiag(p['pos_w2'], p['vel_w2']))        # (32,32)
    wslab = put(wslab, OFF_G12,
                jnp.concatenate([p['g1_w'], p['g2_w']], axis=-1))            # (32,128)
    wslab = put(wslab, OFF_GCN1,
                jnp.concatenate([p['gcn1_w1'], p['gcn1_w2']], axis=0))       # (64,32)
    wslab = put(wslab, OFF_GCN2,
                jnp.concatenate([p['gcn2_w1'], p['gcn2_w2']], axis=0))       # (64,64)
    wslab = put(wslab, OFF_GCN3,
                jnp.concatenate([p['gcn3_w1'], p['gcn3_w2']], axis=0))       # (128,64)
    wslab = put(wslab, OFF_LOC1,
                jnp.concatenate([p['loc_w1'][0], p['loc_w1'][1],
                                 p['loc_w1'][2]], axis=0))                   # (192,64)
    wslab = put(wslab, OFF_LOC2, p['loc_w2'])                                # (64,128)
    wslab = put(wslab, OFF_FC, p['fc_w'])                                    # (128,10)
    wslab = wslab.astype(bf16)

    cslab = jnp.zeros((C_ROWS, 128), f32)
    cslab = put(cslab, R_BEMB1, jnp.concatenate([p['pos_b1'], p['vel_b1']], axis=-1))
    cslab = put(cslab, R_BEMB2, jnp.concatenate([p['pos_b2'], p['vel_b2']], axis=-1))
    cslab = put(cslab, R_BG12, jnp.concatenate([p['g1_b'], p['g2_b']], axis=-1))
    for rbase, name in ((R_GCN1, 'gcn1'), (R_GCN2, 'gcn2'), (R_GCN3, 'gcn3')):
        cslab = put(cslab, rbase, p[name + '_b1'] + p[name + '_b2'])  # fused bias
        cslab = put(cslab, rbase + 1, p[name + '_bn_s'])
        cslab = put(cslab, rbase + 2, p[name + '_bn_sh'])
    cslab = put(cslab, R_LOCB1, p['loc_b1'])
    cslab = put(cslab, R_LOCS1, p['loc_bn1_s'])
    cslab = put(cslab, R_LOCSH1, p['loc_bn1_sh'])
    cslab = put(cslab, R_LOCB2, p['loc_b2'])
    cslab = put(cslab, R_LOCS2, p['loc_bn2_s'])
    cslab = put(cslab, R_LOCSH2, p['loc_bn2_sh'])
    cslab = put(cslab, R_FCB, p['fc_b'])

    # spatial / temporal one-hot embeddings are batch constants (eye @ w == w)
    spa = _relu(jnp.dot(_relu(p['spa_w1'] + p['spa_b1']), p['spa_w2'])
                + p['spa_b2'])                                   # (V, C1)
    tem = _relu(jnp.dot(_relu(p['tem_w1'] + p['tem_b1']), p['tem_w2'])
                + p['tem_b2'])                                   # (T, C3)
    cslab = put(cslab, R_SPA, jnp.tile(spa, (T, 1)))             # pre-tiled (64, C1)
    cslab = put(cslab, R_TEM, tem)                               # (T, C3)

    # block-diagonal softmax mask (64x64 per sample, 8x8 diagonal blocks)
    rblk = np.arange(TV)[:, None] // V
    cblk = np.arange(TV)[None, :] // V
    mask = jnp.asarray(np.where(rblk == cblk, 0.0, -1e30), f32)
    cslab = put(cslab, R_MASK, mask)

    # folded input BatchNorm affine, applied in the wrapper ((V,6) layout)
    bn_s6 = jnp.concatenate([p['pos_bn_s'], p['vel_bn_s']], axis=-1)
    bn_b6 = jnp.concatenate([p['pos_bn_b'], p['vel_bn_b']], axis=-1)
    return wslab, cslab, bn_s6, bn_b6


if __name__ == "__main__":
    key = jax.random.PRNGKey(0)
    kx, kp = jax.random.split(key)

    # Module input: x of shape (bs, step, dim) with dim = num_point * 3.
    x = jax.random.normal(kx, (BS, SEG, NUM_POINT * IN_CH), jnp.float32)
    raw = build_raw_params(kp)
    packed = pack_params(raw)

    # Glue reshape to kernel layout (B, T, V, 3) (== PyTorch x1 before permute).
    x_l = x.reshape(BS, SEG, NUM_POINT, IN_CH)

    y, g = sgn_pallas(x_l, *packed)
    jax.block_until_ready((y, g))

    # Reference 1: same bf16-matmul math, straightforward per-sequence form.
    y_r1, g_r1 = jax.jit(lambda a, b: sgn_reference(a, b, bf16_matmul=True))(x_l, raw)
    # Reference 2: full f32 math (precision sanity check for the bf16 MXU path).
    with jax.default_matmul_precision("highest"):
        y_r2, g_r2 = jax.jit(lambda a, b: sgn_reference(a, b, bf16_matmul=False))(x_l, raw)
    jax.block_until_ready((y_r1, g_r1, y_r2, g_r2))

    assert y.shape == (BS, NUM_CLASS)
    assert g.shape == (BS, SEG, NUM_POINT, NUM_POINT)
    assert np.all(np.isfinite(np.asarray(y))) and np.all(np.isfinite(np.asarray(g)))
    assert np.allclose(np.asarray(y), np.asarray(y_r1), atol=2e-2, rtol=2e-2)
    assert np.allclose(np.asarray(g), np.asarray(g_r1), atol=2e-2, rtol=2e-2)
    assert np.allclose(np.asarray(y), np.asarray(y_r2), atol=1e-1, rtol=1e-1)
    assert np.allclose(np.asarray(g), np.asarray(g_r2), atol=5e-2, rtol=5e-2)

    print("KERNEL_OK")
</pallas_src>

<mosaic_0001>
module attributes {stable_mosaic.version = 11 : i64} {
  func.func @sgn_kernel(%arg0: i32, %arg1: memref<1x64x16xbf16, #tpu.memory_space<vmem>>, %arg2: memref<720x128xbf16, #tpu.memory_space<vmem>>, %arg3: memref<160x128xf32, #tpu.memory_space<vmem>>, %arg4: memref<1x8x128xf32, #tpu.memory_space<vmem>>, %arg5: memref<1x64x64xf32, #tpu.memory_space<vmem>>) attributes {dimension_semantics = [#tpu.dimension_semantics<parallel>], iteration_bounds = array<i64: 2>, scalar_prefetch = 0 : i64, scratch_operands = 0 : i64, tpu.core_type = #tpu.core_type<tc>, window_params = [{transform_indices = @transform_0, window_bounds = array<i64: 1, 64, 16>}, {pipeline_mode = #tpu.pipeline_mode<synchronous>, transform_indices = @transform_1, window_bounds = array<i64: 720, 128>}, {pipeline_mode = #tpu.pipeline_mode<synchronous>, transform_indices = @transform_2, window_bounds = array<i64: 160, 128>}, {transform_indices = @transform_3, window_bounds = array<i64: 1, 8, 128>}, {transform_indices = @transform_4, window_bounds = array<i64: 1, 64, 64>}]} {
    %c0 = arith.constant 0 : index
    %c0_0 = arith.constant 0 : index
    %c0_1 = arith.constant 0 : index
    %0 = vector.load %arg1[%c0, %c0_0, %c0_1] : memref<1x64x16xbf16, #tpu.memory_space<vmem>>, vector<1x64x16xbf16>
    %1 = vector.shape_cast %0 : vector<1x64x16xbf16> to vector<64x16xbf16>
    %c0_2 = arith.constant 0 : index
    %c0_3 = arith.constant 0 : index
    %2 = vector.load %arg2[%c0_2, %c0_3] : memref<720x128xbf16, #tpu.memory_space<vmem>>, vector<16x32xbf16>
    %cst = arith.constant dense<0.000000e+00> : vector<64x32xf32>
    %3 = tpu.matmul %1, %2, %cst {dimension_numbers = #tpu.dot_dimension_numbers<[1], [0], [0], [1], [0, 0, 1, 1], [], []>} : vector<64x16xbf16>, vector<16x32xbf16>, vector<64x32xf32> -> vector<64x32xf32>
    %c0_4 = arith.constant 0 : index
    %c0_5 = arith.constant 0 : index
    %4 = vector.load %arg3[%c0_4, %c0_5] : memref<160x128xf32, #tpu.memory_space<vmem>>, vector<1x32xf32>
    %5 = vector.broadcast %4 : vector<1x32xf32> to vector<64x32xf32>
    %6 = arith.addf %3, %5 : vector<64x32xf32>
    %cst_6 = arith.constant 0.000000e+00 : f32
    %7 = vector.broadcast %cst_6 : f32 to vector<64x32xf32>
    %8 = arith.maximumf %6, %7 : vector<64x32xf32>
    %9 = arith.truncf %8 : vector<64x32xf32> to vector<64x32xbf16>
    %c16 = arith.constant 16 : index
    %c0_7 = arith.constant 0 : index
    %10 = vector.load %arg2[%c16, %c0_7] : memref<720x128xbf16, #tpu.memory_space<vmem>>, vector<32x32xbf16>
    %cst_8 = arith.constant dense<0.000000e+00> : vector<64x32xf32>
    %11 = tpu.matmul %9, %10, %cst_8 {dimension_numbers = #tpu.dot_dimension_numbers<[1], [0], [0], [1], [0, 0, 1, 1], [], []>} : vector<64x32xbf16>, vector<32x32xbf16>, vector<64x32xf32> -> vector<64x32xf32>
    %c1 = arith.constant 1 : index
    %c0_9 = arith.constant 0 : index
    %12 = vector.load %arg3[%c1, %c0_9] : memref<160x128xf32, #tpu.memory_space<vmem>>, vector<1x32xf32>
    %13 = vector.broadcast %12 : vector<1x32xf32> to vector<64x32xf32>
    %14 = arith.addf %11, %13 : vector<64x32xf32>
    %cst_10 = arith.constant 0.000000e+00 : f32
    %15 = vector.broadcast %cst_10 : f32 to vector<64x32xf32>
    %16 = arith.maximumf %14, %15 : vector<64x32xf32>
    %17 = vector.extract_strided_slice %16 {offsets = [0, 0], sizes = [64, 16], strides = [1, 1]} : vector<64x32xf32> to vector<64x16xf32>
    %18 = vector.extract_strided_slice %16 {offsets = [0, 16], sizes = [64, 16], strides = [1, 1]} : vector<64x32xf32> to vector<64x16xf32>
    %19 = arith.addf %17, %18 : vector<64x16xf32>
    %c24 = arith.constant 24 : index
    %c0_11 = arith.constant 0 : index
    %20 = vector.load %arg3[%c24, %c0_11] : memref<160x128xf32, #tpu.memory_space<vmem>>, vector<64x16xf32>
    %21 = tpu.concatenate %19, %20 in 1 : vector<64x16xf32>, vector<64x16xf32> -> vector<64x32xf32>
    %22 = arith.truncf %21 : vector<64x32xf32> to vector<64x32xbf16>
    %c48 = arith.constant 48 : index
    %c0_12 = arith.constant 0 : index
    %23 = vector.load %arg2[%c48, %c0_12] : memref<720x128xbf16, #tpu.memory_space<vmem>>, vector<32x128xbf16>
    %cst_13 = arith.constant dense<0.000000e+00> : vector<64x128xf32>
    %24 = tpu.matmul %22, %23, %cst_13 {dimension_numbers = #tpu.dot_dimension_numbers<[1], [0], [0], [1], [0, 0, 1, 1], [], []>} : vector<64x32xbf16>, vector<32x128xbf16>, vector<64x128xf32> -> vector<64x128xf32>
    %c2 = arith.constant 2 : index
    %c0_14 = arith.constant 0 : index
    %25 = vector.load %arg3[%c2, %c0_14] : memref<160x128xf32, #tpu.memory_space<vmem>>, vector<1x128xf32>
    %26 = vector.broadcast %25 : vector<1x128xf32> to vector<64x128xf32>
    %27 = arith.addf %24, %26 : vector<64x128xf32>
    %28 = arith.truncf %27 : vector<64x128xf32> to vector<64x128xbf16>
    %29 = vector.extract_strided_slice %28 {offsets = [0, 0], sizes = [64, 64], strides = [1, 1]} : vector<64x128xbf16> to vector<64x64xbf16>
    %30 = vector.extract_strided_slice %28 {offsets = [0, 64], sizes = [64, 64], strides = [1, 1]} : vector<64x128xbf16> to vector<64x64xbf16>
    %cst_15 = arith.constant dense<0.000000e+00> : vector<64x64xf32>
    %31 = tpu.matmul %29, %30, %cst_15 {dimension_numbers = #tpu.dot_dimension_numbers<[1], [1], [0], [0], [0, 0, 1, 0], [], []>} : vector<64x64xbf16>, vector<64x64xbf16>, vector<64x64xf32> -> vector<64x64xf32>
    %c96 = arith.constant 96 : index
    %c0_16 = arith.constant 0 : index
    %32 = vector.load %arg3[%c96, %c0_16] : memref<160x128xf32, #tpu.memory_space<vmem>>, vector<64x64xf32>
    %33 = arith.addf %31, %32 : vector<64x64xf32>
    %cst_17 = arith.constant dense<0xFF800000> : vector<64xf32>
    %34 = vector.multi_reduction <maximumf>, %33, %cst_17 [1] : vector<64x64xf32> to vector<64xf32>
    %35 = vector.shape_cast %34 : vector<64xf32> to vector<64x1xf32>
    %36 = vector.broadcast %35 : vector<64x1xf32> to vector<64x64xf32>
    %37 = arith.subf %33, %36 : vector<64x64xf32>
    %38 = math.exp %37 : vector<64x64xf32>
    %cst_18 = arith.constant dense<0.000000e+00> : vector<64xf32>
    %39 = vector.multi_reduction <add>, %38, %cst_18 [1] : vector<64x64xf32> to vector<64xf32>
    %40 = vector.shape_cast %39 : vector<64xf32> to vector<64x1xf32>
    %41 = tpu.reciprocal %40 {approx = true} : vector<64x1xf32> -> vector<64x1xf32>
    %42 = vector.broadcast %41 : vector<64x1xf32> to vector<64x64xf32>
    %43 = arith.mulf %38, %42 : vector<64x64xf32>
    %44 = arith.truncf %43 : vector<64x64xf32> to vector<64x64xbf16>
    %c0_19 = arith.constant 0 : index
    %c0_20 = arith.constant 0 : index
    %c0_21 = arith.constant 0 : index
    %45 = vector.load %arg5[%c0_19, %c0_20, %c0_21] : memref<1x64x64xf32, #tpu.memory_space<vmem>>, vector<1x64x64xf32>
    %46 = vector.shape_cast %45 : vector<1x64x64xf32> to vector<64x64xf32>
    %47 = vector.shape_cast %43 : vector<64x64xf32> to vector<1x64x64xf32>
    tpu.vector_store %arg5[%c0_19, %c0_20, %c0_21], %47 {strides = array<i32>} : memref<1x64x64xf32, #tpu.memory_space<vmem>>, vector<1x64x64xf32>,
    %cst_22 = arith.constant dense<0.000000e+00> : vector<64x32xf32>
    %48 = tpu.matmul %44, %22, %cst_22 {dimension_numbers = #tpu.dot_dimension_numbers<[1], [0], [0], [1], [0, 0, 1, 1], [], []>} : vector<64x64xbf16>, vector<64x32xbf16>, vector<64x32xf32> -> vector<64x32xf32>
    %49 = arith.truncf %48 : vector<64x32xf32> to vector<64x32xbf16>
    %50 = tpu.concatenate %49, %22 in 1 : vector<64x32xbf16>, vector<64x32xbf16> -> vector<64x64xbf16>
    %c80 = arith.constant 80 : index
    %c0_23 = arith.constant 0 : index
    %51 = vector.load %arg2[%c80, %c0_23] : memref<720x128xbf16, #tpu.memory_space<vmem>>, vector<64x32xbf16>
    %cst_24 = arith.constant dense<0.000000e+00> : vector<64x32xf32>
    %52 = tpu.matmul %50, %51, %cst_24 {dimension_numbers = #tpu.dot_dimension_numbers<[1], [0], [0], [1], [0, 0, 1, 1], [], []>} : vector<64x64xbf16>, vector<64x32xbf16>, vector<64x32xf32> -> vector<64x32xf32>
    %c3 = arith.constant 3 : index
    %c0_25 = arith.constant 0 : index
    %53 = vector.load %arg3[%c3, %c0_25] : memref<160x128xf32, #tpu.memory_space<vmem>>, vector<1x32xf32>
    %54 = vector.broadcast %53 : vector<1x32xf32> to vector<64x32xf32>
    %55 = arith.addf %52, %54 : vector<64x32xf32>
    %c4 = arith.constant 4 : index
    %c0_26 = arith.constant 0 : index
    %56 = vector.load %arg3[%c4, %c0_26] : memref<160x128xf32, #tpu.memory_space<vmem>>, vector<1x32xf32>
    %57 = vector.broadcast %56 : vector<1x32xf32> to vector<64x32xf32>
    %58 = arith.mulf %55, %57 : vector<64x32xf32>
    %c5 = arith.constant 5 : index
    %c0_27 = arith.constant 0 : index
    %59 = vector.load %arg3[%c5, %c0_27] : memref<160x128xf32, #tpu.memory_space<vmem>>, vector<1x32xf32>
    %60 = vector.broadcast %59 : vector<1x32xf32> to vector<64x32xf32>
    %61 = arith.addf %58, %60 : vector<64x32xf32>
    %cst_28 = arith.constant 0.000000e+00 : f32
    %62 = vector.broadcast %cst_28 : f32 to vector<64x32xf32>
    %63 = arith.maximumf %61, %62 : vector<64x32xf32>
    %64 = arith.truncf %63 : vector<64x32xf32> to vector<64x32xbf16>
    %cst_29 = arith.constant dense<0.000000e+00> : vector<64x32xf32>
    %65 = tpu.matmul %44, %64, %cst_29 {dimension_numbers = #tpu.dot_dimension_numbers<[1], [0], [0], [1], [0, 0, 1, 1], [], []>} : vector<64x64xbf16>, vector<64x32xbf16>, vector<64x32xf32> -> vector<64x32xf32>
    %66 = arith.truncf %65 : vector<64x32xf32> to vector<64x32xbf16>
    %67 = tpu.concatenate %66, %64 in 1 : vector<64x32xbf16>, vector<64x32xbf16> -> vector<64x64xbf16>
    %c144 = arith.constant 144 : index
    %c0_30 = arith.constant 0 : index
    %68 = vector.load %arg2[%c144, %c0_30] : memref<720x128xbf16, #tpu.memory_space<vmem>>, vector<64x64xbf16>
    %cst_31 = arith.constant dense<0.000000e+00> : vector<64x64xf32>
    %69 = tpu.matmul %67, %68, %cst_31 {dimension_numbers = #tpu.dot_dimension_numbers<[1], [0], [0], [1], [0, 0, 1, 1], [], []>} : vector<64x64xbf16>, vector<64x64xbf16>, vector<64x64xf32> -> vector<64x64xf32>
    %c6 = arith.constant 6 : index
    %c0_32 = arith.constant 0 : index
    %70 = vector.load %arg3[%c6, %c0_32] : memref<160x128xf32, #tpu.memory_space<vmem>>, vector<1x64xf32>
    %71 = vector.broadcast %70 : vector<1x64xf32> to vector<64x64xf32>
    %72 = arith.addf %69, %71 : vector<64x64xf32>
    %c7 = arith.constant 7 : index
    %c0_33 = arith.constant 0 : index
    %73 = vector.load %arg3[%c7, %c0_33] : memref<160x128xf32, #tpu.memory_space<vmem>>, vector<1x64xf32>
    %74 = vector.broadcast %73 : vector<1x64xf32> to vector<64x64xf32>
    %75 = arith.mulf %72, %74 : vector<64x64xf32>
    %c8 = arith.constant 8 : index
    %c0_34 = arith.constant 0 : index
    %76 = vector.load %arg3[%c8, %c0_34] : memref<160x128xf32, #tpu.memory_space<vmem>>, vector<1x64xf32>
    %77 = vector.broadcast %76 : vector<1x64xf32> to vector<64x64xf32>
    %78 = arith.addf %75, %77 : vector<64x64xf32>
    %cst_35 = arith.constant 0.000000e+00 : f32
    %79 = vector.broadcast %cst_35 : f32 to vector<64x64xf32>
    %80 = arith.maximumf %78, %79 : vector<64x64xf32>
    %81 = arith.truncf %80 : vector<64x64xf32> to vector<64x64xbf16>
    %cst_36 = arith.constant dense<0.000000e+00> : vector<64x64xf32>
    %82 = tpu.matmul %44, %81, %cst_36 {dimension_numbers = #tpu.dot_dimension_numbers<[1], [0], [0], [1], [0, 0, 1, 1], [], []>} : vector<64x64xbf16>, vector<64x64xbf16>, vector<64x64xf32> -> vector<64x64xf32>
    %83 = arith.truncf %82 : vector<64x64xf32> to vector<64x64xbf16>
    %84 = tpu.concatenate %83, %81 in 1 : vector<64x64xbf16>, vector<64x64xbf16> -> vector<64x128xbf16>
    %c208 = arith.constant 208 : index
    %c0_37 = arith.constant 0 : index
    %85 = vector.load %arg2[%c208, %c0_37] : memref<720x128xbf16, #tpu.memory_space<vmem>>, vector<128x64xbf16>
    %cst_38 = arith.constant dense<0.000000e+00> : vector<64x64xf32>
    %86 = tpu.matmul %84, %85, %cst_38 {dimension_numbers = #tpu.dot_dimension_numbers<[1], [0], [0], [1], [0, 0, 1, 1], [], []>} : vector<64x128xbf16>, vector<128x64xbf16>, vector<64x64xf32> -> vector<64x64xf32>
    %c9 = arith.constant 9 : index
    %c0_39 = arith.constant 0 : index
    %87 = vector.load %arg3[%c9, %c0_39] : memref<160x128xf32, #tpu.memory_space<vmem>>, vector<1x64xf32>
    %88 = vector.broadcast %87 : vector<1x64xf32> to vector<64x64xf32>
    %89 = arith.addf %86, %88 : vector<64x64xf32>
    %c10 = arith.constant 10 : index
    %c0_40 = arith.constant 0 : index
    %90 = vector.load %arg3[%c10, %c0_40] : memref<160x128xf32, #tpu.memory_space<vmem>>, vector<1x64xf32>
    %91 = vector.broadcast %90 : vector<1x64xf32> to vector<64x64xf32>
    %92 = arith.mulf %89, %91 : vector<64x64xf32>
    %c11 = arith.constant 11 : index
    %c0_41 = arith.constant 0 : index
    %93 = vector.load %arg3[%c11, %c0_41] : memref<160x128xf32, #tpu.memory_space<vmem>>, vector<1x64xf32>
    %94 = vector.broadcast %93 : vector<1x64xf32> to vector<64x64xf32>
    %95 = arith.addf %92, %94 : vector<64x64xf32>
    %cst_42 = arith.constant 0.000000e+00 : f32
    %96 = vector.broadcast %cst_42 : f32 to vector<64x64xf32>
    %97 = arith.maximumf %95, %96 : vector<64x64xf32>
    %98 = vector.shape_cast %97 : vector<64x64xf32> to vector<8x8x64xf32>
    %cst_43 = arith.constant dense<0xFF800000> : vector<8x64xf32>
    %99 = vector.multi_reduction <maximumf>, %98, %cst_43 [1] : vector<8x8x64xf32> to vector<8x64xf32>
    %c88 = arith.constant 88 : index
    %c0_44 = arith.constant 0 : index
    %100 = vector.load %arg3[%c88, %c0_44] : memref<160x128xf32, #tpu.memory_space<vmem>>, vector<8x64xf32>
    %101 = arith.addf %99, %100 : vector<8x64xf32>
    %cst_45 = arith.constant 0.000000e+00 : f32
    %102 = vector.broadcast %cst_45 : f32 to vector<1x64xf32>
    %103 = vector.extract_strided_slice %101 {offsets = [0, 0], sizes = [7, 64], strides = [1, 1]} : vector<8x64xf32> to vector<7x64xf32>
    %104 = tpu.concatenate %102, %103 in 0 : vector<1x64xf32>, vector<7x64xf32> -> vector<8x64xf32>
    %105 = vector.extract_strided_slice %101 {offsets = [1, 0], sizes = [7, 64], strides = [1, 1]} : vector<8x64xf32> to vector<7x64xf32>
    %106 = tpu.concatenate %105, %102 in 0 : vector<7x64xf32>, vector<1x64xf32> -> vector<8x64xf32>
    %107 = tpu.concatenate %104, %101, %106 in 1 : vector<8x64xf32>, vector<8x64xf32>, vector<8x64xf32> -> vector<8x192xf32>
    %108 = arith.truncf %107 : vector<8x192xf32> to vector<8x192xbf16>
    %c336 = arith.constant 336 : index
    %c0_46 = arith.constant 0 : index
    %109 = vector.load %arg2[%c336, %c0_46] : memref<720x128xbf16, #tpu.memory_space<vmem>>, vector<192x64xbf16>
    %cst_47 = arith.constant dense<0.000000e+00> : vector<8x64xf32>
    %110 = tpu.matmul %108, %109, %cst_47 {dimension_numbers = #tpu.dot_dimension_numbers<[1], [0], [0], [1], [0, 0, 1, 1], [], []>} : vector<8x192xbf16>, vector<192x64xbf16>, vector<8x64xf32> -> vector<8x64xf32>
    %c12 = arith.constant 12 : index
    %c0_48 = arith.constant 0 : index
    %111 = vector.load %arg3[%c12, %c0_48] : memref<160x128xf32, #tpu.memory_space<vmem>>, vector<1x64xf32>
    %112 = vector.broadcast %111 : vector<1x64xf32> to vector<8x64xf32>
    %113 = arith.addf %110, %112 : vector<8x64xf32>
    %c13 = arith.constant 13 : index
    %c0_49 = arith.constant 0 : index
    %114 = vector.load %arg3[%c13, %c0_49] : memref<160x128xf32, #tpu.memory_space<vmem>>, vector<1x64xf32>
    %115 = vector.broadcast %114 : vector<1x64xf32> to vector<8x64xf32>
    %116 = arith.mulf %113, %115 : vector<8x64xf32>
    %c14 = arith.constant 14 : index
    %c0_50 = arith.constant 0 : index
    %117 = vector.load %arg3[%c14, %c0_50] : memref<160x128xf32, #tpu.memory_space<vmem>>, vector<1x64xf32>
    %118 = vector.broadcast %117 : vector<1x64xf32> to vector<8x64xf32>
    %119 = arith.addf %116, %118 : vector<8x64xf32>
    %cst_51 = arith.constant 0.000000e+00 : f32
    %120 = vector.broadcast %cst_51 : f32 to vector<8x64xf32>
    %121 = arith.maximumf %119, %120 : vector<8x64xf32>
    %122 = arith.truncf %121 : vector<8x64xf32> to vector<8x64xbf16>
    %c528 = arith.constant 528 : index
    %c0_52 = arith.constant 0 : index
    %123 = vector.load %arg2[%c528, %c0_52] : memref<720x128xbf16, #tpu.memory_space<vmem>>, vector<64x128xbf16>
    %cst_53 = arith.constant dense<0.000000e+00> : vector<8x128xf32>
    %124 = tpu.matmul %122, %123, %cst_53 {dimension_numbers = #tpu.dot_dimension_numbers<[1], [0], [0], [1], [0, 0, 1, 1], [], []>} : vector<8x64xbf16>, vector<64x128xbf16>, vector<8x128xf32> -> vector<8x128xf32>
    %c15 = arith.constant 15 : index
    %c0_54 = arith.constant 0 : index
    %125 = vector.load %arg3[%c15, %c0_54] : memref<160x128xf32, #tpu.memory_space<vmem>>, vector<1x128xf32>
    %126 = vector.broadcast %125 : vector<1x128xf32> to vector<8x128xf32>
    %127 = arith.addf %124, %126 : vector<8x128xf32>
    %c16_55 = arith.constant 16 : index
    %c0_56 = arith.constant 0 : index
    %128 = vector.load %arg3[%c16_55, %c0_56] : memref<160x128xf32, #tpu.memory_space<vmem>>, vector<1x128xf32>
    %129 = vector.broadcast %128 : vector<1x128xf32> to vector<8x128xf32>
    %130 = arith.mulf %127, %129 : vector<8x128xf32>
    %c17 = arith.constant 17 : index
    %c0_57 = arith.constant 0 : index
    %131 = vector.load %arg3[%c17, %c0_57] : memref<160x128xf32, #tpu.memory_space<vmem>>, vector<1x128xf32>
    %132 = vector.broadcast %131 : vector<1x128xf32> to vector<8x128xf32>
    %133 = arith.addf %130, %132 : vector<8x128xf32>
    %cst_58 = arith.constant 0.000000e+00 : f32
    %134 = vector.broadcast %cst_58 : f32 to vector<8x128xf32>
    %135 = arith.maximumf %133, %134 : vector<8x128xf32>
    %cst_59 = arith.constant dense<0xFF800000> : vector<128xf32>
    %136 = vector.multi_reduction <maximumf>, %135, %cst_59 [0] : vector<8x128xf32> to vector<128xf32>
    %137 = vector.shape_cast %136 : vector<128xf32> to vector<1x128xf32>
    %138 = arith.truncf %137 : vector<1x128xf32> to vector<1x128xbf16>
    %c592 = arith.constant 592 : index
    %c0_60 = arith.constant 0 : index
    %139 = vector.load %arg2[%c592, %c0_60] : memref<720x128xbf16, #tpu.memory_space<vmem>>, vector<128x128xbf16>
    %cst_61 = arith.constant dense<0.000000e+00> : vector<1x128xf32>
    %140 = tpu.matmul %138, %139, %cst_61 {dimension_numbers = #tpu.dot_dimension_numbers<[1], [0], [0], [1], [0, 0, 1, 1], [], []>} : vector<1x128xbf16>, vector<128x128xbf16>, vector<1x128xf32> -> vector<1x128xf32>
    %c18 = arith.constant 18 : index
    %c0_62 = arith.constant 0 : index
    %141 = vector.load %arg3[%c18, %c0_62] : memref<160x128xf32, #tpu.memory_space<vmem>>, vector<1x128xf32>
    %142 = arith.addf %140, %141 : vector<1x128xf32>
    %143 = vector.shape_cast %142 : vector<1x128xf32> to vector<1x128xf32>
    %144 = vector.broadcast %143 : vector<1x128xf32> to vector<8x128xf32>
    %c0_63 = arith.constant 0 : index
    %c0_64 = arith.constant 0 : index
    %c0_65 = arith.constant 0 : index
    %145 = vector.load %arg4[%c0_63, %c0_64, %c0_65] : memref<1x8x128xf32, #tpu.memory_space<vmem>>, vector<1x8x128xf32>
    %146 = vector.shape_cast %145 : vector<1x8x128xf32> to vector<8x128xf32>
    %147 = vector.shape_cast %144 : vector<8x128xf32> to vector<1x8x128xf32>
    tpu.vector_store %arg4[%c0_63, %c0_64, %c0_65], %147 {strides = array<i32>} : memref<1x8x128xf32, #tpu.memory_space<vmem>>, vector<1x8x128xf32>,
    return
  }
  func.func @transform_0(%arg0: i32) -> (i32, i32, i32) {
    %c0_i32 = arith.constant 0 : i32
    %c0_i32_0 = arith.constant 0 : i32
    %c0_i32_1 = arith.constant 0 : i32
    return %arg0, %c0_i32, %c0_i32_0 : i32, i32, i32
  }
  func.func @transform_1(%arg0: i32) -> (i32, i32) {
    %c0_i32 = arith.constant 0 : i32
    %c0_i32_0 = arith.constant 0 : i32
    %c0_i32_1 = arith.constant 0 : i32
    return %c0_i32, %c0_i32_0 : i32, i32
  }
  func.func @transform_2(%arg0: i32) -> (i32, i32) {
    %c0_i32 = arith.constant 0 : i32
    %c0_i32_0 = arith.constant 0 : i32
    %c0_i32_1 = arith.constant 0 : i32
    return %c0_i32, %c0_i32_0 : i32, i32
  }
  func.func @transform_3(%arg0: i32) -> (i32, i32, i32) {
    %c0_i32 = arith.constant 0 : i32
    %c0_i32_0 = arith.constant 0 : i32
    %c0_i32_1 = arith.constant 0 : i32
    return %arg0, %c0_i32, %c0_i32_0 : i32, i32, i32
  }
  func.func @transform_4(%arg0: i32) -> (i32, i32, i32) {
    %c0_i32 = arith.constant 0 : i32
    %c0_i32_0 = arith.constant 0 : i32
    %c0_i32_1 = arith.constant 0 : i32
    return %arg0, %c0_i32, %c0_i32_0 : i32, i32, i32
  }
}

</mosaic_0001>

<bundles_post_ra>
// kernel: sgn_pallas.1
= control target key start
LH: loop header
LB: loop body
LE: loop exit
PB: predicated region body
PF: predicated region fallthrough
CT: control target
= control target key end

     0   :  { %s2768_s15 = smov 0   ;;  %s3278_s0 = inlined_call_operand.vmem [shape: bf16[2,64,16], index: 0, kind: input, shape index: {}]   ;;  %s3279_s1 = inlined_call_operand.vmem [shape: bf16[720,128], index: 1, kind: input, shape index: {}]   ;;  %s3280_s2 = inlined_call_operand.vmem [shape: f32[160,128], index: 2, kind: input, shape index: {}]   ;;  %s3281_s3 = inlined_call_operand.vmem [shape: f32[2,8,128], index: 3, kind: output, shape index: {0}]   ;;  %s3282_s4 = inlined_call_operand.vmem [shape: f32[2,64,64], index: 4, kind: output, shape index: {1}]  }
   0x1 LB: > { %s2212_s16 = sadd.s32 4294967295, %s2734_s15   ;;  %p2216_p0 = scmp.ge.s32.totalorder %s2734_s15, 1  ;;  %s2734_s15 = sphi %s2768_s15, %s15_s15  }
   0x2   : > { %p165_p1 = scmp.lt.s32.totalorder %s2734_s15, 3 }
   0x4   : > { %p166_p2 = pnand %p2216_p0, %p165_p1 }
   0x5   : > { %v2647_v0 = vld [vmem:[%s3279_s1] sm:$0xff] (!%p166_p2)   ;;  %p195_p3 = scmp.lt.s32.totalorder (!%p166_p2), %s2212_s16, 1  ;;  %v2652_v1 = vld [vmem:[%s3279_s1 + $0x8] sm:$0xff] (!%p166_p2)   ;;  %vm251_vm0 = vcmask (!%p166_p2), 130048   ;;  %v2653_v6 = vld [vmem:[%s3279_s1 + $0x10] sm:$0xff] (!%p166_p2)   ;;  %vm362_vm1 = vcmask (!%p166_p2), 261120  }
   0x6   : > { %169 = sbr.rel (%p166_p2) target bundleno = 3678 (0xe5e), region = 32  ;;  %2422 = vmatprep.subr.bf16.mxu1 (!%p166_p2), %v2647_v0  ;;  %v2222_v7 = vld [vmem:[%s3280_s2] ss:$0 sm:$0xff] (!%p166_p2)  ;;  %v2654_v36 = vld [vmem:[%s3279_s1 + $0x18] sm:$0xff] (!%p166_p2)   ;;  %v2232_v37 = vld [vmem:[%s3280_s2 + $0x1] ss:$0 sm:$0xff] (!%p166_p2) }
   0x7   : > { %2423 = vmatpush3.bf16.msra.mxu1 (!%p166_p2), %v2647_v0  ;;  %2444 = vmatprep.subr.bf16.mxu0 (!%p166_p2), %v2654_v36  ;;  %v2655_v39 = vld [vmem:[%s3279_s1 + $0x20] sm:$0xff] (!%p166_p2)   ;;  %s2736_s9 = smov (!%p166_p2), 112   ;;  %v490_v49 = vld [vmem:[%s3280_s2 + $0x28] sm:$0xff] (!%p166_p2)  ;;  %v491_v50 = vld [vmem:[%s3280_s2 + $0x30] sm:$0xff] (!%p166_p2)  ;;  %s2737_s20 = smov (!%p166_p2), 16   ;;  %vm662_vm2 = vcmask (!%p166_p2), 523264  }
   0x8   : > { %2432 = vmatprep.subr.bf16.mxu1 (!%p166_p2), %v2652_v1  ;;  %2445 = vmatpush3.bf16.msra.mxu0 (!%p166_p2), %v2654_v36  ;;  %v488_v52 = vld [vmem:[%s3280_s2 + $0x18] sm:$0xff] (!%p166_p2)  ;;  %v489_v53 = vld [vmem:[%s3280_s2 + $0x20] sm:$0xff] (!%p166_p2)  ;;  %v2632_v57 = vpack.i.bf16 (!%p166_p2), %v491_v50, %v490_v49  ;;  %s2738_s5 = smov (!%p166_p2), 64   ;;  %vm1723_vm3 = vcmask (!%p166_p2), 1041409   ;;  %vm1701_vm4 = vcmask (!%p166_p2), 1042434   ;;  %vm1704_vm5 = vcmask (!%p166_p2), 1043459  }
   0x9   : > { %2446 = vmatprep.subr.bf16.mxu0 (!%p166_p2), %v2655_v39  ;;  %v2627_v60 = vpack.i.bf16 (!%p166_p2), %v489_v53, %v488_v52  ;;  %v2239_v52 = vld [vmem:[%s3280_s2 + $0x2] ss:$0 sm:$0xff] (!%p166_p2)  ;;  %vm1707_vm6 = vcmask (!%p166_p2), 1044484   ;;  %vm1710_vm7 = vcmask (!%p166_p2), 1045509   ;;  %vm1713_vm8 = vcmask (!%p166_p2), 1046534  }
   0xa   : > { %vm1716_vm9 = vcmask (!%p166_p2), 1047559   ;;  %vm1736_vm10 = vcmask (!%p166_p2), 1046528   ;;  %vm1719_vm11 = vcmask (!%p166_p2), 1040384   ;;  %vm2742_vm12 = vmmov (!%p166_p2), 0  }
   0xc   : > { %2447 = vmatpush3.bf16.msra.mxu0 (!%p166_p2), %v2655_v39 }
   0xd   : > { %s3284_s16 = smov (!%p195_p3, %s2212_s16), 1 }
   0xe   : > { %s2329_s21 = sshll.u32 %s3284_s16, 5  ;;  %s2330_s27 = sshll.u32 %s3284_s16, 6 }
   0xf   : > { %s199_s24 = scalar_lea.vmem %s3278_s0, %s2329_s21  ;;  %s2949_s30 = scalar_lea.vmem %s3282_s4, %s2330_s27 }
  0x10   : > { %v2648_v2 = vld [vmem:[%s199_s24] sm:$0xff]   ;;  %v2649_v3 = vld [vmem:[%s199_s24 + $0x8] sm:$0xff]   ;;  %v2650_v4 = vld [vmem:[%s199_s24 + $0x10] sm:$0xff]  }
  0x11   : > { %2424 = vmatprep.mubr.msk.bf16.mxu1 %vm251_vm0, %v2648_v2  ;;  %v2651_v5 = vld [vmem:[%s199_s24 + $0x18] sm:$0xff]   ;;  %s2739_s24 = smov 32  }
  0x12   : > { %2425 = vmatmul.mubr.msk.bf16.vlgmr.msra.gmra.mrb[0].mxu1 %vm251_vm0, %v2649_v3  ;;  %v494_v3 = vld [vmem:[%s3280_s2 + $0x48] sm:$0xff] }
  0x13   : > { %2428 = vmatprep.mubr.msk.bf16.mxu1 %vm251_vm0, %v2650_v4  ;;  %2433 = vmatpush3.bf16.msra.mxu1 %v2652_v1  ;;  %v495_v4 = vld [vmem:[%s3280_s2 + $0x50] sm:$0xff] }
  0x14   : > { %2434 = vmatprep.subr.bf16.mxu1 %v2653_v6 }
  0x17   : > { %2435 = vmatpush3.bf16.msra.mxu1 %v2653_v6  ;;  %v492_v6 = vld [vmem:[%s3280_s2 + $0x38] sm:$0xff] }
  0x1a   : > { %2429 = vmatmul.mubr.msk.bf16.gmra.mrb[4].mxu1 %vm251_vm0, %v2651_v5 }
  0xe5   : > { %v2426_v8 = vpop.f32.mrb[0].mxu1 }
  0xe6   : > { %v307_v9 = vadd.f32 %v2426_v8, %v2222_v7  ;;  %v298_v10 = vpop.f32.mrb[1].mxu1 }
  0xe7   : > { %v299_v11 = vadd.f32 %v2222_v7, %v298_v10  ;;  %v2427_v12 = vpop.f32.mrb[2].mxu1 }
  0xe8   : > { %v310_v13 = vadd.f32 %v2427_v12, %v2222_v7  ;;  %v301_v14 = vpop.f32.mrb[3].mxu1  ;;  %v331_v16 = vmax.f32 %v307_v9, 0.0  ;;  %v2642_v9 = vpack.i.bf16 %v495_v4, %v494_v3 }
  0xe9   : > { %v302_v15 = vadd.f32 %v2222_v7, %v301_v14  ;;  %v329_v18 = vmax.f32 %v299_v11, 0.0 }
  0xea   : > { %v332_v17 = vmax.f32 %v310_v13, 0.0 }
  0xeb   : > { %v330_v19 = vmax.f32 %v302_v15, 0.0 }
  0xec   : > { %v338_v20 = vpack.c.bf16 %v332_v17, %v331_v16 }
  0xed   : > { %v337_v21 = vpack.c.bf16 %v330_v19, %v329_v18  ;;  %v2430_v22 = vpop.f32.mrb[4].mxu1 }
  0xee   : > { %v323_v23 = vadd.f32 %v2430_v22, %v2222_v7  ;;  %v314_v24 = vpop.f32.mrb[5].mxu1 }
  0xef   : > { %v315_v25 = vadd.f32 %v2222_v7, %v314_v24  ;;  %2436 = vmatprep.mubr.msk.bf16.mxu1 %vm362_vm1, %v337_v21  ;;  %v2431_v26 = vpop.f32.mrb[6].mxu1 }
  0xf0   : > { %v335_v27 = vmax.f32 %v323_v23, 0.0  ;;  %v326_v28 = vadd.f32 %v2431_v26, %v2222_v7  ;;  %2437 = vmatmul.mubr.msk.bf16.vlgmr.msra.gmra.mrb[8].mxu1 %vm362_vm1, %v338_v20  ;;  %v317_v29 = vpop.f32.mrb[7].mxu1 }
  0xf1   : > { %v333_v30 = vmax.f32 %v315_v25, 0.0  ;;  %v318_v31 = vadd.f32 %v2222_v7, %v317_v29  ;;  %v493_v7 = vld [vmem:[%s3280_s2 + $0x40] sm:$0xff] }
  0xf2   : > { %v336_v32 = vmax.f32 %v326_v28, 0.0  ;;  %v2637_v10 = vpack.i.bf16 %v493_v7, %v492_v6 }
  0xf3   : > { %v334_v33 = vmax.f32 %v318_v31, 0.0 }
  0xf4   : > { %v340_v34 = vpack.c.bf16 %v336_v32, %v335_v27 }
  0xf5   : > { %v339_v35 = vpack.c.bf16 %v334_v33, %v333_v30 }
  0xf7   : > { %2440 = vmatprep.mubr.msk.bf16.mxu1 %vm362_vm1, %v339_v35 }
  0xf8   : > { %2441 = vmatmul.mubr.msk.bf16.gmra.mrb[12].mxu1 %vm362_vm1, %v340_v34 }
 0x1c3   : > { %v2438_v38 = vpop.f32.mrb[8].mxu1 }
 0x1c4   : > { %v418_v40 = vadd.f32 %v2438_v38, %v2232_v37  ;;  %v409_v41 = vpop.f32.mrb[9].mxu1 }
 0x1c5   : > { %v410_v42 = vadd.f32 %v2232_v37, %v409_v41  ;;  %v2439_v43 = vpop.f32.mrb[10].mxu1 }
 0x1c6   : > { %v442_v44 = vmax.f32 %v418_v40, 0.0  ;;  %v421_v45 = vadd.f32 %v2439_v43, %v2232_v37  ;;  %v412_v46 = vpop.f32.mrb[11].mxu1 }
 0x1c7   : > { %v440_v47 = vmax.f32 %v410_v42, 0.0  ;;  %v413_v48 = vadd.f32 %v2232_v37, %v412_v46 }
 0x1c8   : > { %460 = vrot.lane.b32.xlu1 %v442_v44, %s2736_s9  ;;  %v443_v51 = vmax.f32 %v421_v45, 0.0 }
 0x1c9   : > { %456 = vrot.lane.b32.xlu0 %v440_v47, %s2736_s9  ;;  %v441_v54 = vmax.f32 %v413_v48, 0.0 }
 0x1cb   : > { %v2442_v55 = vpop.f32.mrb[12].mxu1 }
 0x1cc   : > { %462 = vrot.lane.b32.xlu1 %v443_v51, %s2736_s9  ;;  %v425_v56 = vpop.f32.mrb[13].mxu1  ;;  %v434_v58 = vadd.f32 %v2442_v55, %v2232_v37 }
 0x1cd   : > { %458 = vrot.lane.b32.xlu0 %v441_v54, %s2736_s9  ;;  %v2443_v59 = vpop.f32.mrb[14].mxu1  ;;  %v426_v2 = vadd.f32 %v2232_v37, %v425_v56 }
 0x1ce   : > { %v437_v61 = vadd.f32 %v2443_v59, %v2232_v37  ;;  %v428_v62 = vpop.f32.mrb[15].mxu1  ;;  %v446_v0 = vmax.f32 %v434_v58, 0.0 }
 0x1cf   : > { %v429_v1 = vadd.f32 %v2232_v37, %v428_v62  ;;  %v444_v8 = vmax.f32 %v426_v2, 0.0 }
 0x1d0   : > { %v447_v63 = vmax.f32 %v437_v61, 0.0  ;;  %2633 = vrot.lane.b32.xlu1 %v2632_v57, %s2737_s20 }
 0x1d1   : > { %2628 = vrot.lane.b32.xlu0 %v2627_v60, %s2737_s20  ;;  %v445_v5 = vmax.f32 %v429_v1, 0.0 }
 0x1d4   : > { %470 = vrot.lane.b32.xlu1 %v447_v63, %s2736_s9 }
 0x1d5   : > { %468 = vrot.lane.b32.xlu0 %v446_v0, %s2736_s9 }
 0x1d8   : > { %466 = vrot.lane.b32.xlu1 %v445_v5, %s2736_s9 }
 0x1d9   : > { %464 = vrot.lane.b32.xlu0 %v444_v8, %s2736_s9 }
 0x1dc   : > { %2643 = vrot.lane.b32.xlu1 %v2642_v9, %s2737_s20 }
 0x1dd   : > { %2638 = vrot.lane.b32.xlu0 %v2637_v10, %s2737_s20 }
 0x23a   : > { %v461_v11 = vpop.permute.xlu1 %460 }
 0x23b   : > { %v457_v12 = vpop.permute.xlu0 %456  ;;  %v482_v16 = vadd.f32 %v461_v11, %v442_v44 }
 0x23c   : > { %v480_v21 = vadd.f32 %v457_v12, %v440_v47 }
 0x23e   : > { %v463_v13 = vpop.permute.xlu1 %462 }
 0x23f   : > { %v459_v14 = vpop.permute.xlu0 %458  ;;  %v483_v17 = vadd.f32 %v463_v13, %v443_v51 }
 0x240   : > { %v481_v22 = vadd.f32 %v459_v14, %v441_v54 }
 0x242   : > { %v2634_v15 = vpop.permute.xlu1 %2633 }
 0x243   : > { %v2636_v18 = vunpack.i.h.bf16 %v2634_v15  ;;  %v2635_v19 = vunpack.i.l.bf16 %v2634_v15  ;;  %v2629_v20 = vpop.permute.xlu0 %2628 }
 0x244   : > { %v2631_v23 = vunpack.i.h.bf16 %v2629_v20  ;;  %v2630_v24 = vunpack.i.l.bf16 %v2629_v20  ;;  %v643_v20 = vld [vmem:[%s3280_s2 + $0x68] sm:$0xff] }
 0x245   : > { %v531_v25 = vsel %vm251_vm0, %v483_v17, %v2636_v18  ;;  %v530_v26 = vsel %vm251_vm0, %v482_v16, %v2635_v19  ;;  %v642_v16 = vld [vmem:[%s3280_s2 + $0x60] sm:$0xff]  ;;  %v644_v18 = vld [vmem:[%s3280_s2 + $0x70] sm:$0xff] }
 0x246   : > { %v529_v27 = vsel %vm251_vm0, %v481_v22, %v2631_v23  ;;  %v528_v28 = vsel %vm251_vm0, %v480_v21, %v2630_v24  ;;  %v471_v29 = vpop.permute.xlu1 %470  ;;  %v2849_v32 = vpack.c.bf16 %v531_v25, %v530_v26 }
 0x247   : > { %v2847_v30 = vpack.c.bf16 %v529_v27, %v528_v28  ;;  %v469_v31 = vpop.permute.xlu0 %468  ;;  %v487_v36 = vadd.f32 %v471_v29, %v447_v63  ;;  %v645_v27 = vld [vmem:[%s3280_s2 + $0x78] sm:$0xff]  ;;  %v646_v29 = vld [vmem:[%s3280_s2 + $0x80] sm:$0xff] }
 0x248   : > { %v486_v37 = vadd.f32 %v469_v31, %v446_v0 }
 0x249   : > { %2448 = vmatprep.mubr.msk.bf16.mxu0 %vm362_vm1, %v2847_v30  ;;  %2472 = vmatprep.subr.bf16.mxu0 %v2847_v30 }
 0x24a   : > { %v467_v33 = vpop.permute.xlu1 %466  ;;  %2449 = vmatmul.mubr.msk.bf16.vlgmr.msra.gmra.mrb[0].mxu0 %vm362_vm1, %v2849_v32 }
 0x24b   : > { %2473 = vmatpush3.bf16.msra.mxu0 %v2847_v30  ;;  %v465_v34 = vpop.permute.xlu0 %464  ;;  %v485_v41 = vadd.f32 %v467_v33, %v445_v5 }
 0x24c   : > { %2474 = vmatprep.subr.bf16.mxu0 %v2849_v32  ;;  %v484_v42 = vadd.f32 %v465_v34, %v444_v8 }
 0x24e   : > { %v2644_v35 = vpop.permute.xlu1 %2643 }
 0x24f   : > { %v2646_v38 = vunpack.i.h.bf16 %v2644_v35  ;;  %v2645_v39 = vunpack.i.l.bf16 %v2644_v35  ;;  %2475 = vmatpush3.bf16.msra.mxu0 %v2849_v32  ;;  %v2639_v40 = vpop.permute.xlu0 %2638  ;;  %v648_v35 = vld [vmem:[%s3280_s2 + $0x90] sm:$0xff] }
 0x250   : > { %v2641_v43 = vunpack.i.h.bf16 %v2639_v40  ;;  %v2640_v44 = vunpack.i.l.bf16 %v2639_v40 }
 0x251   : > { %v535_v45 = vsel %vm251_vm0, %v487_v36, %v2646_v38  ;;  %v534_v46 = vsel %vm251_vm0, %v486_v37, %v2645_v39  ;;  %v647_v37 = vld [vmem:[%s3280_s2 + $0x88] sm:$0xff] }
 0x252   : > { %v533_v47 = vsel %vm251_vm0, %v485_v41, %v2641_v43  ;;  %v532_v48 = vsel %vm251_vm0, %v484_v42, %v2640_v44  ;;  %v2865_v50 = vpack.c.bf16 %v535_v45, %v534_v46  ;;  %v649_v45 = vld [vmem:[%s3280_s2 + $0x98] sm:$0xff] }
 0x253   : > { %v2863_v49 = vpack.c.bf16 %v533_v47, %v532_v48 }
 0x255   : > { %2452 = vmatprep.mubr.msk.bf16.mxu0 %vm362_vm1, %v2863_v49  ;;  %2476 = vmatprep.subr.bf16.mxu0 %v2863_v49 }
 0x256   : > { %2453 = vmatmul.mubr.msk.bf16.gmra.mrb[4].mxu0 %vm362_vm1, %v2865_v50 }
 0x257   : > { %2477 = vmatpush3.bf16.msra.mxu0 %v2863_v49 }
 0x258   : > { %2478 = vmatprep.subr.bf16.mxu0 %v2865_v50 }
 0x25b   : > { %2479 = vmatpush3.bf16.msra.mxu0 %v2865_v50 }
 0x31d   : > { %v2450_v51 = vpop.f32.mrb[0].mxu0 }
 0x31e   : > { %v607_v53 = vpop.f32.mrb[1].mxu0  ;;  %v616_v55 = vadd.f32 %v2450_v51, %v2239_v52 }
 0x31f   : > { %v2451_v54 = vpop.f32.mrb[2].mxu0  ;;  %v608_v58 = vadd.f32 %v2239_v52, %v607_v53 }
 0x320   : > { %v619_v56 = vadd.f32 %v2451_v54, %v2239_v52  ;;  %v610_v57 = vpop.f32.mrb[3].mxu0 }
 0x321   : > { %v611_v59 = vadd.f32 %v2239_v52, %v610_v57 }
 0x322   : > { %v639_v60 = vpack.c.bf16 %v619_v56, %v616_v55 }
 0x323   : > { %v638_v61 = vpack.c.bf16 %v611_v59, %v608_v58 }
 0x324   : > { %656 = vrot.lane.b32.xlu1 %v639_v60, %s2738_s5 }
 0x325   : > { %654 = vrot.lane.b32.xlu0 %v638_v61, %s2738_s5  ;;  %2464 = vmatprep.mubr.msk.bf16.mxu1 %vm662_vm2, %v638_v61 }
 0x329   : > { %v2454_v62 = vpop.f32.mrb[4].mxu0 }
 0x32a   : > { %v623_v63 = vpop.f32.mrb[5].mxu0  ;;  %v632_v1 = vadd.f32 %v2454_v62, %v2239_v52 }
 0x32b   : > { %v2455_v0 = vpop.f32.mrb[6].mxu0  ;;  %v624_v4 = vadd.f32 %v2239_v52, %v623_v63 }
 0x32c   : > { %v635_v2 = vadd.f32 %v2455_v0, %v2239_v52  ;;  %v626_v3 = vpop.f32.mrb[7].mxu0 }
 0x32d   : > { %v627_v5 = vadd.f32 %v2239_v52, %v626_v3 }
 0x32e   : > { %v641_v6 = vpack.c.bf16 %v635_v2, %v632_v1 }
 0x32f   : > { %v640_v7 = vpack.c.bf16 %v627_v5, %v624_v4 }
 0x330   : > { %660 = vrot.lane.b32.xlu1 %v641_v6, %s2738_s5 }
 0x331   : > { %658 = vrot.lane.b32.xlu0 %v640_v7, %s2738_s5 }
 0x396   : > { %v657_v10 = vpop.permute.xlu1 %656 }
 0x397   : > { %v655_v8 = vpop.permute.xlu0 %654  ;;  %v679_v11 = vsel %vm662_vm2, %v657_v10, 0 }
 0x398   : > { %v676_v9 = vsel %vm662_vm2, %v655_v8, 0  ;;  %2608 = vmatprep.subr.msk.bf16.mxu1 %vm662_vm2, %v655_v8 }
 0x399   : > { %2457 = vmatpush3.bf16.xpose.msra.mxu1 %v676_v9 }
 0x39a   : > { %2609 = vmatprep.subr.msk.bf16.mxu1 %vm662_vm2, %v657_v10 }
 0x3a1   : > { %2459 = vmatpush3.bf16.xpose.msra.mxu1 %v679_v11 }
 0x3a2   : > { %v661_v14 = vpop.permute.xlu1 %660 }
 0x3a3   : > { %v659_v12 = vpop.permute.xlu0 %658  ;;  %v685_v15 = vsel %vm662_vm2, %v661_v14, 0 }
 0x3a4   : > { %2610 = vmatprep.subr.msk.bf16.mxu1 %vm662_vm2, %v659_v12  ;;  %v682_v13 = vsel %vm662_vm2, %v659_v12, 0 }
 0x3a9   : > { %2461 = vmatpush3.bf16.xpose.msra.mxu1 %v682_v13 }
 0x3aa   : > { %2611 = vmatprep.subr.msk.bf16.mxu1 %vm662_vm2, %v661_v14 }
 0x3b1   : > { %2463 = vmatpush3.bf16.xpose.msra.mxu1 %v685_v15 }
 0x3b8   : > { %2465 = vmatmul.mubr.msk.bf16.vlgmr.msra.gmra.mrb[16].mxu1 %vm662_vm2, %v639_v60 }
 0x3b9   : > { %2468 = vmatprep.mubr.msk.bf16.mxu1 %vm662_vm2, %v640_v7 }
 0x3c0   : > { %2469 = vmatmul.mubr.msk.bf16.gmra.mrb[20].mxu1 %vm662_vm2, %v641_v6 }
 0x48b   : > { %v2466_v17 = vpop.f32.mrb[16].mxu1 }
 0x48c   : > { %v721_v19 = vpop.f32.mrb[17].mxu1  ;;  %v730_v24 = vadd.f32 %v2466_v17, %v644_v18 }
 0x48d   : > { %v722_v21 = vadd.f32 %v721_v19, %v642_v16  ;;  %v2467_v22 = vpop.f32.mrb[18].mxu1 }
 0x48e   : > { %v724_v23 = vpop.f32.mrb[19].mxu1  ;;  %v733_v31 = vadd.f32 %v2467_v22, %v645_v27  ;;  %v758_v34 = vsel %vm662_vm2, %v730_v24, -inf }
 0x48f   : > { %v725_v25 = vadd.f32 %v724_v23, %v643_v20  ;;  %v752_v26 = vsel %vm662_vm2, %v722_v21, -inf }
 0x490   : > { %753 = vmax.xlane.f32.xlu0 %v752_v26  ;;  %v761_v44 = vsel %vm662_vm2, %v733_v31, -inf }
 0x491   : > { %v755_v28 = vsel %vm662_vm2, %v725_v25, -inf }
 0x492   : > { %756 = vmax.xlane.f32.xlu1 %v755_v28  ;;  %v2656_v28 = vld [vmem:[%s3279_s1 + $0x28] sm:$0xff]  }
 0x493   : > { %v2470_v33 = vpop.f32.mrb[20].mxu1  ;;  %2488 = vmatprep.subr.bf16.mxu0 %v2656_v28 }
 0x494   : > { %v737_v36 = vpop.f32.mrb[21].mxu1  ;;  %759 = vmax.xlane.f32.xlu0 %v758_v34  ;;  %v746_v41 = vadd.f32 %v2470_v33, %v648_v35 }
 0x495   : > { %v738_v38 = vadd.f32 %v737_v36, %v646_v29  ;;  %v2471_v39 = vpop.f32.mrb[22].mxu1 }
 0x496   : > { %v740_v40 = vpop.f32.mrb[23].mxu1  ;;  %v749_v46 = vadd.f32 %v2471_v39, %v649_v45  ;;  %v770_v47 = vsel %vm662_vm2, %v746_v41, -inf }
 0x497   : > { %v741_v42 = vadd.f32 %v740_v40, %v647_v37  ;;  %v764_v43 = vsel %vm662_vm2, %v738_v38, -inf }
 0x498   : > { %765 = vmax.xlane.f32.xlu1 %v764_v43  ;;  %762 = vmax.xlane.f32.xlu0 %v761_v44  ;;  %v773_v51 = vsel %vm662_vm2, %v749_v46, -inf }
 0x499   : > { %v767_v48 = vsel %vm662_vm2, %v741_v42, -inf }
 0x49c   : > { %771 = vmax.xlane.f32.xlu1 %v770_v47  ;;  %768 = vmax.xlane.f32.xlu0 %v767_v48  ;;  %v2657_v48 = vld [vmem:[%s3279_s1 + $0x30] sm:$0xff]  }
 0x4a0   : > { %774 = vmax.xlane.f32.xlu0 %v773_v51 }
 0x51d   : > { %v754_v52 = vpop.xlane.xlu0 %753 }
 0x51e   : > { %v776_v53 = vsub.f32 %v722_v21, %v754_v52 }
 0x51f   : > { %v757_v54 = vpop.xlane.xlu1 %756 }
 0x520   : > { %v784_v55 = vmul.f32 1.442695, %v776_v53  ;;  %v777_v56 = vsub.f32 %v725_v25, %v757_v54 }
 0x521   : > { %v760_v57 = vpop.xlane.xlu0 %759 }
 0x522   : > { %2696 = vpow2.f32 %v784_v55  ;;  %v786_v58 = vmul.f32 1.442695, %v777_v56  ;;  %v778_v59 = vsub.f32 %v730_v24, %v760_v57 }
 0x524   : > { %2698 = vpow2.f32 %v786_v58  ;;  %v788_v60 = vmul.f32 1.442695, %v778_v59  ;;  %v2658_v58 = vld [vmem:[%s3279_s1 + $0x38] sm:$0xff]   ;;  %v2659_v59 = vld [vmem:[%s3279_s1 + $0x40] sm:$0xff]  }
 0x525   : > { %v766_v61 = vpop.xlane.xlu1 %765  ;;  %v763_v62 = vpop.xlane.xlu0 %762 }
 0x526   : > { %2700 = vpow2.f32 %v788_v60  ;;  %v780_v63 = vsub.f32 %v738_v38, %v766_v61  ;;  %v779_v0 = vsub.f32 %v733_v31, %v763_v62 }
 0x528   : > { %v792_v1 = vmul.f32 1.442695, %v780_v63  ;;  %v790_v2 = vmul.f32 1.442695, %v779_v0 }
 0x529   : > { %v772_v3 = vpop.xlane.xlu1 %771  ;;  %v769_v4 = vpop.xlane.xlu0 %768 }
 0x52a   : > { %2702 = vpow2.f32 %v792_v1  ;;  %v782_v5 = vsub.f32 %v746_v41, %v772_v3  ;;  %v781_v6 = vsub.f32 %v741_v42, %v769_v4 }
 0x52b   : > { %2704 = vpow2.f32 %v790_v2 }
 0x52c   : > { %v2697_v7 = vpop.eup %2696  ;;  %v796_v8 = vmul.f32 1.442695, %v782_v5  ;;  %v794_v9 = vmul.f32 1.442695, %v781_v6 }
 0x52d   : > { %v775_v10 = vpop.xlane.xlu0 %774  ;;  %v800_v11 = vsel %vm662_vm2, %v2697_v7, 0.0 }
 0x52e   : > { %v2699_v12 = vpop.eup %2698  ;;  %2706 = vpow2.f32 %v796_v8  ;;  %v783_v13 = vsub.f32 %v749_v46, %v775_v10  ;;  %801 = vadd.xlane.f32.xlu1 %v800_v11 }
 0x52f   : > { %2708 = vpow2.f32 %v794_v9  ;;  %v803_v14 = vsel %vm662_vm2, %v2699_v12, 0.0 }
 0x530   : > { %v2701_v15 = vpop.eup %2700  ;;  %v798_v16 = vmul.f32 1.442695, %v783_v13  ;;  %804 = vadd.xlane.f32.xlu0 %v803_v14 }
 0x531   : > { %v806_v17 = vsel %vm662_vm2, %v2701_v15, 0.0 }
 0x532   : > { %2710 = vpow2.f32 %v798_v16  ;;  %807 = vadd.xlane.f32.xlu1 %v806_v17  ;;  %v2254_v16 = vld [vmem:[%s3280_s2 + $0x3] ss:$0 sm:$0xff] }
 0x534   : > { %v2703_v18 = vpop.eup %2702 }
 0x535   : > { %v2705_v19 = vpop.eup %2704  ;;  %v812_v20 = vsel %vm662_vm2, %v2703_v18, 0.0 }
 0x536   : > { %813 = vadd.xlane.f32.xlu1 %v812_v20  ;;  %v809_v21 = vsel %vm662_vm2, %v2705_v19, 0.0 }
 0x537   : > { %810 = vadd.xlane.f32.xlu0 %v809_v21  ;;  %v2264_v21 = vld [vmem:[%s3280_s2 + $0x5] ss:$0 sm:$0xff] }
 0x538   : > { %v2707_v22 = vpop.eup %2706 }
 0x539   : > { %v2709_v23 = vpop.eup %2708  ;;  %v818_v24 = vsel %vm662_vm2, %v2707_v22, 0.0 }
 0x53a   : > { %819 = vadd.xlane.f32.xlu1 %v818_v24  ;;  %v815_v25 = vsel %vm662_vm2, %v2709_v23, 0.0 }
 0x53b   : > { %816 = vadd.xlane.f32.xlu0 %v815_v25 }
 0x53c   : > { %v2711_v26 = vpop.eup %2710 }
 0x53d   : > { %v821_v27 = vsel %vm662_vm2, %v2711_v26, 0.0 }
 0x53f   : > { %822 = vadd.xlane.f32.xlu0 %v821_v27 }
 0x54b   : > { %937 = vrot.lane.b32.xlu1 %v2847_v30, %s2739_s24 }
 0x54f   : > { %941 = vrot.lane.b32.xlu1 %v2863_v49, %s2739_s24 }
 0x553   : > { %943 = vrot.lane.b32.xlu1 %v2865_v50, %s2739_s24 }
 0x555   : > { %939 = vrot.lane.b32.xlu0 %v2849_v32, %s2739_s24 }
 0x5bb   : > { %v802_v29 = vpop.xlane.xlu1 %801 }
 0x5bc   : > { %2712 = vrcp.f32 %v802_v29 }
 0x5bd   : > { %v805_v31 = vpop.xlane.xlu0 %804 }
 0x5be   : > { %2714 = vrcp.f32 %v805_v31 }
 0x5bf   : > { %v808_v33 = vpop.xlane.xlu1 %807 }
 0x5c0   : > { %2716 = vrcp.f32 %v808_v33 }
 0x5c3   : > { %v814_v30 = vpop.xlane.xlu1 %813 }
 0x5c4   : > { %2718 = vrcp.f32 %v814_v30  ;;  %v811_v49 = vpop.xlane.xlu0 %810 }
 0x5c5   : > { %2720 = vrcp.f32 %v811_v49 }
 0x5c6   : > { %v2713_v50 = vpop.eup %2712 }
 0x5c7   : > { %v820_v32 = vpop.xlane.xlu1 %819  ;;  %v832_v34 = vmul.f32 %v2713_v50, %v2697_v7 }
 0x5c8   : > { %v2715_v35 = vpop.eup %2714  ;;  %2722 = vrcp.f32 %v820_v32  ;;  %v817_v36 = vpop.xlane.xlu0 %816 }
 0x5c9   : > { %2724 = vrcp.f32 %v817_v36  ;;  %v833_v37 = vmul.f32 %v2715_v35, %v2699_v12  ;;  %844 = vst.msk [vmem:[%s2949_s30] sm:$0xff] %vm662_vm2, %v832_v34  ;;  %v2661_v35 = vld [vmem:[%s3279_s1 + $0x50] sm:$0xff]  }
 0x5ca   : > { %v2717_v38 = vpop.eup %2716 }
 0x5cb   : > { %v834_v39 = vmul.f32 %v2717_v38, %v2701_v15  ;;  %v2953_v40 = vpack.c.bf16 %v833_v37, %v832_v34  ;;  %845 = vst.msk [vmem:[%s2949_s30 + $0x8] sm:$0xff] %vm662_vm2, %v833_v37  ;;  %v938_v62 = vpop.permute.xlu1 %937  ;;  %v2660_v34 = vld [vmem:[%s3279_s1 + $0x48] sm:$0xff]  }
 0x5cc   : > { %v823_v41 = vpop.xlane.xlu0 %822 }
 0x5cd   : > { %846 = vst.msk [vmem:[%s2949_s30 + $0x10] sm:$0xff] %vm662_vm2, %v834_v39  ;;  %2726 = vrcp.f32 %v823_v41  ;;  %2480 = vmatprep.mubr.msk.bf16.mxu0 %vm662_vm2, %v2953_v40  ;;  %2512 = vmatprep.mubr.msk.bf16.mxu1 %vm662_vm2, %v2953_v40 }
 0x5ce   : > { %v2719_v42 = vpop.eup %2718 }
 0x5cf   : > { %v2721_v43 = vpop.eup %2720  ;;  %v836_v44 = vmul.f32 %v2719_v42, %v2703_v18  ;;  %v942_v6 = vpop.permute.xlu1 %941  ;;  %v2263_v18 = vld [vmem:[%s3280_s2 + $0x4] ss:$0 sm:$0xff] }
 0x5d0   : > { %v835_v45 = vmul.f32 %v2721_v43, %v2705_v19  ;;  %v940_v3 = vpop.permute.xlu0 %939 }
 0x5d1   : > { %848 = vst.msk [vmem:[%s2949_s30 + $0x20] sm:$0xff] %vm662_vm2, %v836_v44 }
 0x5d2   : > { %v2723_v46 = vpop.eup %2722  ;;  %v2965_v47 = vpack.c.bf16 %v835_v45, %v834_v39  ;;  %847 = vst.msk [vmem:[%s2949_s30 + $0x18] sm:$0xff] %vm662_vm2, %v835_v45 }
 0x5d3   : > { %v2725_v51 = vpop.eup %2724  ;;  %v838_v52 = vmul.f32 %v2723_v46, %v2707_v22  ;;  %v944_v13 = vpop.permute.xlu1 %943 }
 0x5d4   : > { %2481 = vmatmul.mubr.msk.bf16.vlgmr.msra.gmra.mrb[8].mxu0 %vm662_vm2, %v2965_v47  ;;  %v837_v53 = vmul.f32 %v2725_v51, %v2709_v23 }
 0x5d5   : > { %850 = vst.msk [vmem:[%s2949_s30 + $0x30] sm:$0xff] %vm662_vm2, %v838_v52  ;;  %2489 = vmatpush3.bf16.msra.mxu0 %v2656_v28 }
 0x5d6   : > { %v2976_v54 = vpack.c.bf16 %v837_v53, %v836_v44  ;;  %849 = vst.msk [vmem:[%s2949_s30 + $0x28] sm:$0xff] %vm662_vm2, %v837_v53  ;;  %2490 = vmatprep.subr.bf16.mxu0 %v2657_v48 }
 0x5d7   : > { %v2727_v55 = vpop.eup %2726 }
 0x5d8   : > { %2484 = vmatprep.mubr.msk.bf16.mxu0 %vm662_vm2, %v2976_v54  ;;  %v839_v56 = vmul.f32 %v2727_v55, %v2711_v26 }
 0x5d9   : > { %2491 = vmatpush3.bf16.msra.mxu0 %v2657_v48 }
 0x5da   : > { %v2982_v57 = vpack.c.bf16 %v839_v56, %v838_v52  ;;  %851 = vst.msk [vmem:[%s2949_s30 + $0x38] sm:$0xff] %vm662_vm2, %v839_v56  ;;  %2492 = vmatprep.subr.bf16.mxu0 %v2658_v58 }
 0x5dc   : > { %2485 = vmatmul.mubr.msk.bf16.gmra.mrb[12].mxu0 %vm662_vm2, %v2982_v57 }
 0x5dd   : > { %2493 = vmatpush3.bf16.msra.mxu0 %v2658_v58 }
 0x5de   : > { %2494 = vmatprep.subr.bf16.mxu0 %v2659_v59 }
 0x5e1   : > { %2495 = vmatpush3.bf16.msra.mxu0 %v2659_v59 }
 0x5e2   : > { %2520 = vmatprep.subr.bf16.mxu0 %v2660_v34 }
 0x6a7   : > { %v2482_v60 = vpop.f32.mrb[8].mxu0 }
 0x6a8   : > { %v898_v61 = vpop.f32.mrb[9].mxu0 }
 0x6a9   : > { %v2483_v63 = vpop.f32.mrb[10].mxu0 }
 0x6aa   : > { %v930_v0 = vpack.c.bf16 %v2483_v63, %v2482_v60  ;;  %v901_v1 = vpop.f32.mrb[11].mxu0 }
 0x6ab   : > { %v929_v2 = vpack.c.bf16 %v901_v1, %v898_v61 }
 0x6ac   : > { %v950_v5 = vsel %vm362_vm1, %v930_v0, %v940_v3 }
 0x6ad   : > { %v947_v4 = vsel %vm362_vm1, %v929_v2, %v938_v62 }
 0x6ae   : > { %2496 = vmatprep.mubr.msk.bf16.mxu0 %vm662_vm2, %v947_v4 }
 0x6af   : > { %v2486_v7 = vpop.f32.mrb[12].mxu0  ;;  %2497 = vmatmul.mubr.msk.bf16.vlgmr.msra.gmra.mrb[16].mxu0 %vm662_vm2, %v950_v5  ;;  %v2662_v5 = vld [vmem:[%s3279_s1 + $0x58] sm:$0xff]  }
 0x6b0   : > { %v914_v8 = vpop.f32.mrb[13].mxu0  ;;  %2521 = vmatpush3.bf16.msra.mxu0 %v2660_v34 }
 0x6b1   : > { %v2487_v9 = vpop.f32.mrb[14].mxu0  ;;  %2522 = vmatprep.subr.bf16.mxu0 %v2661_v35 }
 0x6b2   : > { %v932_v10 = vpack.c.bf16 %v2487_v9, %v2486_v7  ;;  %v917_v11 = vpop.f32.mrb[15].mxu0 }
 0x6b3   : > { %v931_v12 = vpack.c.bf16 %v917_v11, %v914_v8 }
 0x6b4   : > { %v956_v15 = vsel %vm362_vm1, %v932_v10, %v944_v13  ;;  %2523 = vmatpush3.bf16.msra.mxu0 %v2661_v35 }
 0x6b5   : > { %v953_v14 = vsel %vm362_vm1, %v931_v12, %v942_v6  ;;  %2524 = vmatprep.subr.bf16.mxu0 %v2662_v5  ;;  %v2663_v6 = vld [vmem:[%s3279_s1 + $0x60] sm:$0xff]  }
 0x6b6   : > { %2500 = vmatprep.mubr.msk.bf16.mxu0 %vm662_vm2, %v953_v14 }
 0x6b7   : > { %2501 = vmatmul.mubr.msk.bf16.gmra.mrb[20].mxu0 %vm662_vm2, %v956_v15 }
 0x6b8   : > { %2525 = vmatpush3.bf16.msra.mxu0 %v2662_v5 }
 0x6b9   : > { %2526 = vmatprep.subr.bf16.mxu0 %v2663_v6 }
 0x6bc   : > { %2527 = vmatpush3.bf16.msra.mxu0 %v2663_v6 }
 0x782   : > { %v2498_v17 = vpop.f32.mrb[16].mxu0 }
 0x783   : > { %v1045_v19 = vadd.f32 %v2498_v17, %v2254_v16  ;;  %v1036_v20 = vpop.f32.mrb[17].mxu0 }
 0x784   : > { %v1037_v22 = vadd.f32 %v2254_v16, %v1036_v20  ;;  %v2499_v23 = vpop.f32.mrb[18].mxu0 }
 0x785   : > { %v1074_v24 = vmul.f32 %v2263_v18, %v1045_v19  ;;  %v1048_v25 = vadd.f32 %v2499_v23, %v2254_v16  ;;  %v1039_v26 = vpop.f32.mrb[19].mxu0 }
 0x786   : > { %v1072_v27 = vmul.f32 %v2263_v18, %v1037_v22  ;;  %v1040_v28 = vadd.f32 %v2254_v16, %v1039_v26  ;;  %v2269_v26 = vld [vmem:[%s3280_s2 + $0x6] ss:$0 sm:$0xff] }
 0x787   : > { %v1087_v29 = vadd.f32 %v2264_v21, %v1074_v24  ;;  %v1075_v31 = vmul.f32 %v2263_v18, %v1048_v25 }
 0x788   : > { %v1085_v33 = vadd.f32 %v2264_v21, %v1072_v27  ;;  %v1073_v30 = vmul.f32 %v2263_v18, %v1040_v28  ;;  %v2278_v28 = vld [vmem:[%s3280_s2 + $0x7] ss:$0 sm:$0xff] }
 0x789   : > { %v1088_v49 = vadd.f32 %v2264_v21, %v1075_v31  ;;  %v1095_v36 = vmax.f32 %v1087_v29, 0.0 }
 0x78a   : > { %v1086_v50 = vadd.f32 %v2264_v21, %v1073_v30  ;;  %v2502_v32 = vpop.f32.mrb[20].mxu0  ;;  %v1093_v41 = vmax.f32 %v1085_v33, 0.0  ;;  %v2279_v33 = vld [vmem:[%s3280_s2 + $0x8] ss:$0 sm:$0xff] }
 0x78b   : > { %v1096_v37 = vmax.f32 %v1088_v49, 0.0  ;;  %v1061_v38 = vadd.f32 %v2502_v32, %v2254_v16  ;;  %v1052_v39 = vpop.f32.mrb[21].mxu0 }
 0x78c   : > { %v1094_v42 = vmax.f32 %v1086_v50, 0.0  ;;  %v1053_v43 = vadd.f32 %v2254_v16, %v1052_v39  ;;  %v2503_v44 = vpop.f32.mrb[22].mxu0 }
 0x78d   : > { %v1078_v45 = vmul.f32 %v2263_v18, %v1061_v38  ;;  %v1064_v46 = vadd.f32 %v2503_v44, %v2254_v16  ;;  %v1055_v48 = vpop.f32.mrb[23].mxu0  ;;  %v1102_v51 = vpack.c.bf16 %v1096_v37, %v1095_v36 }
 0x78e   : > { %v1076_v52 = vmul.f32 %v2263_v18, %v1053_v43  ;;  %v1056_v53 = vadd.f32 %v2254_v16, %v1055_v48  ;;  %v1101_v55 = vpack.c.bf16 %v1094_v42, %v1093_v41 }
 0x78f   : > { %v1091_v56 = vadd.f32 %v2264_v21, %v1078_v45  ;;  %v1079_v58 = vmul.f32 %v2263_v18, %v1064_v46  ;;  %1180 = vrot.lane.b32.xlu1 %v1102_v51, %s2739_s24  ;;  %v2664_v45 = vld [vmem:[%s3279_s1 + $0x68] sm:$0xff]   ;;  %v2665_v46 = vld [vmem:[%s3279_s1 + $0x70] sm:$0xff]  }
 0x790   : > { %v1089_v59 = vadd.f32 %v2264_v21, %v1076_v52  ;;  %v1077_v60 = vmul.f32 %v2263_v18, %v1056_v53  ;;  %1178 = vrot.lane.b32.xlu0 %v1101_v55, %s2739_s24  ;;  %2504 = vmatprep.subr.bf16.mxu1 %v1101_v55 }
 0x791   : > { %v1092_v61 = vadd.f32 %v2264_v21, %v1079_v58  ;;  %2505 = vmatpush3.bf16.msra.mxu1 %v1101_v55  ;;  %v1099_v63 = vmax.f32 %v1091_v56, 0.0  ;;  %2552 = vmatprep.subr.bf16.mxu0 %v2664_v45 }
 0x792   : > { %v1090_v62 = vadd.f32 %v2264_v21, %v1077_v60  ;;  %2506 = vmatprep.subr.bf16.mxu1 %v1102_v51  ;;  %v1097_v1 = vmax.f32 %v1089_v59, 0.0 }
 0x793   : > { %v1100_v0 = vmax.f32 %v1092_v61, 0.0 }
 0x794   : > { %v1098_v2 = vmax.f32 %v1090_v62, 0.0 }
 0x795   : > { %2507 = vmatpush3.bf16.msra.mxu1 %v1102_v51  ;;  %v1104_v3 = vpack.c.bf16 %v1100_v0, %v1099_v63 }
 0x796   : > { %v1103_v4 = vpack.c.bf16 %v1098_v2, %v1097_v1 }
 0x797   : > { %1184 = vrot.lane.b32.xlu1 %v1104_v3, %s2739_s24 }
 0x798   : > { %1182 = vrot.lane.b32.xlu0 %v1103_v4, %s2739_s24  ;;  %2508 = vmatprep.subr.bf16.mxu1 %v1103_v4  ;;  %s2219_s24 = sshll.u32 %s3284_s16, 3 }
 0x799   : > { %2509 = vmatpush3.bf16.msra.mxu1 %v1103_v4  ;;  %s203_s29 = scalar_lea.vmem %s3281_s3, %s2219_s24 }
 0x79a   : > { %2510 = vmatprep.subr.bf16.mxu1 %v1104_v3 }
 0x79d   : > { %2511 = vmatpush3.bf16.msra.mxu1 %v1104_v3  ;;  %v2666_v3 = vld [vmem:[%s3279_s1 + $0x78] sm:$0xff]  }
 0x7a0   : > { %2513 = vmatmul.mubr.msk.bf16.vlgmr.msra.gmra.mrb[24].mxu1 %vm662_vm2, %v2965_v47 }
 0x7a1   : > { %2516 = vmatprep.mubr.msk.bf16.mxu1 %vm662_vm2, %v2976_v54 }
 0x7a8   : > { %2517 = vmatmul.mubr.msk.bf16.gmra.mrb[28].mxu1 %vm662_vm2, %v2982_v57 }
 0x7a9   : > { %2544 = vmatprep.mubr.msk.bf16.mxu1 %vm662_vm2, %v2953_v40 }
 0x801   : > { %v1181_v40 = vpop.permute.xlu1 %1180 }
 0x802   : > { %v1179_v13 = vpop.permute.xlu0 %1178 }
 0x809   : > { %v1185_v23 = vpop.permute.xlu1 %1184 }
 0x80a   : > { %v1183_v22 = vpop.permute.xlu0 %1182 }
 0x873   : > { %v2514_v7 = vpop.f32.mrb[24].mxu1 }
 0x874   : > { %v1139_v8 = vpop.f32.mrb[25].mxu1 }
 0x875   : > { %v2515_v9 = vpop.f32.mrb[26].mxu1 }
 0x876   : > { %v1171_v10 = vpack.c.bf16 %v2515_v9, %v2514_v7  ;;  %v1142_v11 = vpop.f32.mrb[27].mxu1 }
 0x877   : > { %v1170_v12 = vpack.c.bf16 %v1142_v11, %v1139_v8 }
 0x878   : > { %v1191_v15 = vsel %vm362_vm1, %v1171_v10, %v1181_v40  ;;  %v2667_v10 = vld [vmem:[%s3279_s1 + $0x80] sm:$0xff]  }
 0x879   : > { %v1188_v14 = vsel %vm362_vm1, %v1170_v12, %v1179_v13 }
 0x87a   : > { %2528 = vmatprep.mubr.msk.bf16.mxu0 %vm662_vm2, %v1188_v14 }
 0x87b   : > { %v2518_v16 = vpop.f32.mrb[28].mxu1  ;;  %2529 = vmatmul.mubr.msk.bf16.vlgmr.msra.gmra.mrb[24].mxu0 %vm662_vm2, %v1191_v15 }
 0x87c   : > { %v1155_v17 = vpop.f32.mrb[29].mxu1  ;;  %2553 = vmatpush3.bf16.msra.mxu0 %v2664_v45  ;;  %v2680_v45 = vld [vmem:[%s3279_s1 + $0xe8] sm:$0xff]  }
 0x87d   : > { %v2519_v18 = vpop.f32.mrb[30].mxu1  ;;  %2554 = vmatprep.subr.bf16.mxu0 %v2665_v46 }
 0x87e   : > { %v1173_v19 = vpack.c.bf16 %v2519_v18, %v2518_v16  ;;  %v1158_v20 = vpop.f32.mrb[31].mxu1  ;;  %v2668_v16 = vld [vmem:[%s3279_s1 + $0x88] sm:$0xff]   ;;  %v2670_v18 = vld [vmem:[%s3279_s1 + $0x98] sm:$0xff]  }
 0x87f   : > { %v1172_v21 = vpack.c.bf16 %v1158_v20, %v1155_v17  ;;  %v2669_v17 = vld [vmem:[%s3279_s1 + $0x90] sm:$0xff]  }
 0x880   : > { %v1197_v25 = vsel %vm362_vm1, %v1173_v19, %v1185_v23  ;;  %2555 = vmatpush3.bf16.msra.mxu0 %v2665_v46  ;;  %v2671_v19 = vld [vmem:[%s3279_s1 + $0xa0] sm:$0xff]   ;;  %v2681_v46 = vld [vmem:[%s3279_s1 + $0xf0] sm:$0xff]  }
 0x881   : > { %v1194_v24 = vsel %vm362_vm1, %v1172_v21, %v1183_v22  ;;  %2556 = vmatprep.subr.bf16.mxu0 %v2666_v3 }
 0x882   : > { %2532 = vmatprep.mubr.msk.bf16.mxu0 %vm662_vm2, %v1194_v24 }
 0x883   : > { %2533 = vmatmul.mubr.msk.bf16.gmra.mrb[28].mxu0 %vm662_vm2, %v1197_v25 }
 0x884   : > { %2557 = vmatpush3.bf16.msra.mxu0 %v2666_v3 }
 0x885   : > { %2558 = vmatprep.subr.bf16.mxu0 %v2667_v10 }
 0x888   : > { %2559 = vmatpush3.bf16.msra.mxu0 %v2667_v10 }
 0x889   : > { %2560 = vmatprep.subr.bf16.mxu0 %v2668_v16 }
 0x88c   : > { %2561 = vmatpush3.bf16.msra.mxu0 %v2668_v16 }
 0x88d   : > { %2562 = vmatprep.subr.bf16.mxu0 %v2669_v17 }
 0x890   : > { %2563 = vmatpush3.bf16.msra.mxu0 %v2669_v17 }
 0x891   : > { %2564 = vmatprep.subr.bf16.mxu0 %v2670_v18 }
 0x894   : > { %2565 = vmatpush3.bf16.msra.mxu0 %v2670_v18 }
 0x895   : > { %2566 = vmatprep.subr.bf16.mxu0 %v2671_v19 }
 0x898   : > { %2567 = vmatpush3.bf16.msra.mxu0 %v2671_v19 }
 0x94e   : > { %v2530_v27 = vpop.f32.mrb[24].mxu0 }
 0x94f   : > { %v1286_v29 = vadd.f32 %v2530_v27, %v2269_v26  ;;  %v1277_v31 = vpop.f32.mrb[25].mxu0 }
 0x950   : > { %v1278_v30 = vadd.f32 %v2269_v26, %v1277_v31  ;;  %v2531_v49 = vpop.f32.mrb[26].mxu0 }
 0x951   : > { %v1315_v50 = vmul.f32 %v2278_v28, %v1286_v29  ;;  %v1289_v32 = vadd.f32 %v2531_v49, %v2269_v26  ;;  %v1280_v34 = vpop.f32.mrb[27].mxu0 }
 0x952   : > { %v1313_v35 = vmul.f32 %v2278_v28, %v1278_v30  ;;  %v1281_v36 = vadd.f32 %v2269_v26, %v1280_v34 }
 0x953   : > { %v1328_v37 = vadd.f32 %v2279_v33, %v1315_v50  ;;  %v1316_v38 = vmul.f32 %v2278_v28, %v1289_v32 }
 0x954   : > { %v1326_v39 = vadd.f32 %v2279_v33, %v1313_v35  ;;  %v1314_v41 = vmul.f32 %v2278_v28, %v1281_v36  ;;  %v2672_v35 = vld [vmem:[%s3279_s1 + $0xa8] sm:$0xff]   ;;  %v2740_v36 = vmov 0  }
 0x955   : > { %v1329_v42 = vadd.f32 %v2279_v33, %v1316_v38  ;;  %v1336_v48 = vmax.f32 %v1328_v37, 0.0  ;;  %v2673_v37 = vld [vmem:[%s3279_s1 + $0xb0] sm:$0xff]   ;;  %v2674_v38 = vld [vmem:[%s3279_s1 + $0xb8] sm:$0xff]  }
 0x956   : > { %v1327_v43 = vadd.f32 %v2279_v33, %v1314_v41  ;;  %v2534_v44 = vpop.f32.mrb[28].mxu0  ;;  %v1334_v55 = vmax.f32 %v1326_v39, 0.0  ;;  %v2675_v39 = vld [vmem:[%s3279_s1 + $0xc0] sm:$0xff]   ;;  %v2676_v41 = vld [vmem:[%s3279_s1 + $0xc8] sm:$0xff]  }
 0x957   : > { %v1337_v51 = vmax.f32 %v1329_v42, 0.0  ;;  %v1302_v52 = vadd.f32 %v2534_v44, %v2269_v26  ;;  %v1293_v53 = vpop.f32.mrb[29].mxu0  ;;  %v2677_v42 = vld [vmem:[%s3279_s1 + $0xd0] sm:$0xff]   ;;  %v2679_v44 = vld [vmem:[%s3279_s1 + $0xe0] sm:$0xff]  }
 0x958   : > { %v1335_v56 = vmax.f32 %v1327_v43, 0.0  ;;  %v1294_v58 = vadd.f32 %v2269_v26, %v1293_v53  ;;  %v2535_v59 = vpop.f32.mrb[30].mxu0  ;;  %v2678_v43 = vld [vmem:[%s3279_s1 + $0xd8] sm:$0xff]   ;;  %v2293_v53 = vld [vmem:[%s3280_s2 + $0xa] ss:$0 sm:$0xff] }
 0x959   : > { %v1319_v60 = vmul.f32 %v2278_v28, %v1302_v52  ;;  %v1305_v61 = vadd.f32 %v2535_v59, %v2269_v26  ;;  %v1296_v62 = vpop.f32.mrb[31].mxu0  ;;  %v1343_v63 = vpack.c.bf16 %v1337_v51, %v1336_v48  ;;  %v2682_v48 = vld [vmem:[%s3279_s1 + $0xf8] sm:$0xff]   ;;  %v2284_v51 = vld [vmem:[%s3280_s2 + $0x9] ss:$0 sm:$0xff] }
 0x95a   : > { %v1317_v0 = vmul.f32 %v2278_v28, %v1294_v58  ;;  %v1297_v1 = vadd.f32 %v2269_v26, %v1296_v62  ;;  %v1342_v2 = vpack.c.bf16 %v1335_v56, %v1334_v55  ;;  %v3132_v58 = vld [vmem:[%s3280_s2 + $0xb] ss:$0 sm:$0xff] }
 0x95b   : > { %v1332_v4 = vadd.f32 %v2279_v33, %v1319_v60  ;;  %v1320_v5 = vmul.f32 %v2278_v28, %v1305_v61  ;;  %1421 = vrot.lane.b32.xlu1 %v1343_v63, %s2738_s5 }
 0x95c   : > { %v1330_v6 = vadd.f32 %v2279_v33, %v1317_v0  ;;  %v1318_v7 = vmul.f32 %v2278_v28, %v1297_v1  ;;  %1419 = vrot.lane.b32.xlu0 %v1342_v2, %s2738_s5  ;;  %2536 = vmatprep.subr.bf16.mxu1 %v1342_v2  ;;  %v3137_v0 = vld [vmem:[%s3280_s2 + $0x58] sm:$0xff] }
 0x95d   : > { %v1333_v8 = vadd.f32 %v2279_v33, %v1320_v5  ;;  %2537 = vmatpush3.bf16.msra.mxu1 %v1342_v2  ;;  %v1340_v11 = vmax.f32 %v1332_v4, 0.0  ;;  %v1672_v18 = vrot.slane %v3137_v0, 4 }
 0x95e   : > { %v1331_v9 = vadd.f32 %v2279_v33, %v1318_v7  ;;  %2538 = vmatprep.subr.bf16.mxu1 %v1343_v63  ;;  %v1338_v13 = vmax.f32 %v1330_v6, 0.0 }
 0x95f   : > { %v1341_v12 = vmax.f32 %v1333_v8, 0.0  ;;  %v1670_v8 = vrot.slane %v3137_v0, 2 }
 0x960   : > { %v1339_v40 = vmax.f32 %v1331_v9, 0.0 }
 0x961   : > { %2539 = vmatpush3.bf16.msra.mxu1 %v1343_v63  ;;  %v1345_v14 = vpack.c.bf16 %v1341_v12, %v1340_v11  ;;  %v1671_v11 = vrot.slane %v3137_v0, 3 }
 0x962   : > { %v1344_v15 = vpack.c.bf16 %v1339_v40, %v1338_v13  ;;  %v1669_v13 = vrot.slane %v3137_v0, 1 }
 0x963   : > { %1425 = vrot.lane.b32.xlu1 %v1345_v14, %s2738_s5 }
 0x964   : > { %1423 = vrot.lane.b32.xlu0 %v1344_v15, %s2738_s5  ;;  %2540 = vmatprep.subr.bf16.mxu1 %v1344_v15 }
 0x965   : > { %2541 = vmatpush3.bf16.msra.mxu1 %v1344_v15 }
 0x966   : > { %2542 = vmatprep.subr.bf16.mxu1 %v1345_v14 }
 0x969   : > { %2543 = vmatpush3.bf16.msra.mxu1 %v1345_v14 }
 0x96a   : > { %1862 = vmatprep.subr.bf16.mxu1 %v2740_v36 }
 0x96c   : > { %2545 = vmatmul.mubr.msk.bf16.vlgmr.msra.gmra.mrb[32].mxu1 %vm662_vm2, %v2965_v47 }
 0x96d   : > { %2548 = vmatprep.mubr.msk.bf16.mxu1 %vm662_vm2, %v2976_v54  ;;  %1863 = vmatpush1.bf16.msra.mxu1 %v2672_v35 }
 0x96e   : > { %1864 = vmatprep.subr.bf16.mxu1 %v2740_v36 }
 0x971   : > { %1865 = vmatpush1.bf16.msra.mxu1 %v2673_v37 }
 0x972   : > { %1866 = vmatprep.subr.bf16.mxu1 %v2740_v36 }
 0x974   : > { %2549 = vmatmul.mubr.msk.bf16.gmra.mrb[36].mxu1 %vm662_vm2, %v2982_v57 }
 0x975   : > { %1867 = vmatpush1.bf16.msra.mxu1 %v2674_v38 }
 0x976   : > { %1868 = vmatprep.subr.bf16.mxu1 %v2740_v36 }
 0x979   : > { %1869 = vmatpush1.bf16.msra.mxu1 %v2675_v39 }
 0x97a   : > { %1870 = vmatprep.subr.bf16.mxu1 %v2740_v36 }
 0x97d   : > { %1871 = vmatpush1.bf16.msra.mxu1 %v2676_v41 }
 0x97e   : > { %1872 = vmatprep.subr.bf16.mxu1 %v2740_v36 }
 0x981   : > { %1873 = vmatpush1.bf16.msra.mxu1 %v2677_v42 }
 0x982   : > { %1874 = vmatprep.subr.bf16.mxu1 %v2740_v36 }
 0x985   : > { %1875 = vmatpush1.bf16.msra.mxu1 %v2678_v43 }
 0x986   : > { %1876 = vmatprep.subr.bf16.mxu1 %v2740_v36 }
 0x989   : > { %1877 = vmatpush1.bf16.msra.mxu1 %v2679_v44 }
 0x98a   : > { %1878 = vmatprep.subr.bf16.mxu1 %v2740_v36 }
 0x98d   : > { %1879 = vmatpush1.bf16.msra.mxu1 %v2680_v45 }
 0x98e   : > { %1880 = vmatprep.subr.bf16.mxu1 %v2740_v36 }
 0x991   : > { %1881 = vmatpush1.bf16.msra.mxu1 %v2681_v46 }
 0x992   : > { %1882 = vmatprep.subr.bf16.mxu1 %v2740_v36 }
 0x995   : > { %1883 = vmatpush1.bf16.msra.mxu1 %v2682_v48 }
 0x996   : > { %1884 = vmatprep.subr.bf16.mxu1 %v2740_v36 }
 0x9cd   : > { %v1422_v57 = vpop.permute.xlu1 %1421 }
 0x9ce   : > { %v1420_v24 = vpop.permute.xlu0 %1419 }
 0x9d5   : > { %v1426_v50 = vpop.permute.xlu1 %1425 }
 0x9d6   : > { %v1424_v49 = vpop.permute.xlu0 %1423 }
 0xa3f   : > { %v2546_v47 = vpop.f32.mrb[32].mxu1 }
 0xa40   : > { %v1380_v20 = vpop.f32.mrb[33].mxu1 }
 0xa41   : > { %v2547_v21 = vpop.f32.mrb[34].mxu1 }
 0xa42   : > { %v1412_v54 = vpack.c.bf16 %v2547_v21, %v2546_v47  ;;  %v1383_v22 = vpop.f32.mrb[35].mxu1 }
 0xa43   : > { %v1411_v23 = vpack.c.bf16 %v1383_v22, %v1380_v20 }
 0xa44   : > { %v1433_v26 = vsel %vm662_vm2, %v1412_v54, %v1422_v57 }
 0xa45   : > { %v1429_v25 = vsel %vm662_vm2, %v1411_v23, %v1420_v24 }
 0xa46   : > { %2568 = vmatprep.mubr.bf16.mxu0 %v1429_v25 }
 0xa47   : > { %v2550_v27 = vpop.f32.mrb[36].mxu1  ;;  %2569 = vmatmul.mubr.bf16.vlgmr.msra.gmra.mrb[32].mxu0 %v1433_v26 }
 0xa48   : > { %v1396_v28 = vpop.f32.mrb[37].mxu1 }
 0xa49   : > { %v2551_v29 = vpop.f32.mrb[38].mxu1 }
 0xa4a   : > { %v1414_v31 = vpack.c.bf16 %v2551_v29, %v2550_v27  ;;  %v1399_v33 = vpop.f32.mrb[39].mxu1 }
 0xa4b   : > { %v1413_v30 = vpack.c.bf16 %v1399_v33, %v1396_v28 }
 0xa4c   : > { %v1441_v34 = vsel %vm662_vm2, %v1414_v31, %v1426_v50 }
 0xa4d   : > { %v1437_v32 = vsel %vm662_vm2, %v1413_v30, %v1424_v49 }
 0xa4e   : > { %2572 = vmatprep.mubr.bf16.mxu0 %v1437_v32 }
 0xa4f   : > { %2573 = vmatmul.mubr.bf16.gmra.mrb[36].mxu0 %v1441_v34 }
 0xb1a   : > { %v2570_v52 = vpop.f32.mrb[32].mxu0 }
 0xb1b   : > { %v1555_v55 = vadd.f32 %v2570_v52, %v2284_v51  ;;  %v1546_v56 = vpop.f32.mrb[33].mxu0 }
 0xb1c   : > { %v1547_v59 = vadd.f32 %v2284_v51, %v1546_v56  ;;  %v2571_v60 = vpop.f32.mrb[34].mxu0 }
 0xb1d   : > { %v1584_v61 = vmul.f32 %v2293_v53, %v1555_v55  ;;  %v1558_v62 = vadd.f32 %v2571_v60, %v2284_v51  ;;  %v1549_v63 = vpop.f32.mrb[35].mxu0 }
 0xb1e   : > { %v1582_v1 = vmul.f32 %v2293_v53, %v1547_v59  ;;  %v1550_v2 = vadd.f32 %v2284_v51, %v1549_v63 }
 0xb1f   : > { %v1597_v3 = vadd.f32 %v3132_v58, %v1584_v61  ;;  %v1585_v4 = vmul.f32 %v2293_v53, %v1558_v62 }
 0xb20   : > { %v1595_v5 = vadd.f32 %v3132_v58, %v1582_v1  ;;  %v1583_v6 = vmul.f32 %v2293_v53, %v1550_v2 }
 0xb21   : > { %v1605_v7 = vmax.f32 %v1597_v3, 0.0  ;;  %v1598_v9 = vadd.f32 %v3132_v58, %v1585_v4 }
 0xb22   : > { %v1603_v10 = vmax.f32 %v1595_v5, 0.0  ;;  %v1596_v12 = vadd.f32 %v3132_v58, %v1583_v6  ;;  %v2574_v40 = vpop.f32.mrb[36].mxu0 }
 0xb23   : > { %v1625_v14 = vsel %vm662_vm2, %v1605_v7, -inf  ;;  %v1606_v15 = vmax.f32 %v1598_v9, 0.0  ;;  %v1571_v16 = vadd.f32 %v2574_v40, %v2284_v51  ;;  %v1562_v17 = vpop.f32.mrb[37].mxu0 }
 0xb24   : > { %v1626_v19 = vrot.slane %v1625_v14, 4  ;;  %v1611_v47 = vsel %vm662_vm2, %v1603_v10, -inf  ;;  %v1604_v20 = vmax.f32 %v1596_v12, 0.0  ;;  %v1563_v21 = vadd.f32 %v2284_v51, %v1562_v17  ;;  %v2575_v54 = vpop.f32.mrb[38].mxu0 }
 0xb25   : > { %v1612_v22 = vrot.slane %v1611_v47, 4  ;;  %v1632_v23 = vsel %vm662_vm2, %v1606_v15, -inf  ;;  %v1588_v24 = vmul.f32 %v2293_v53, %v1571_v16  ;;  %v1574_v57 = vadd.f32 %v2575_v54, %v2284_v51  ;;  %v1565_v25 = vpop.f32.mrb[39].mxu0 }
 0xb26   : > { %v1627_v26 = vmax.f32 %v1625_v14, %v1626_v19  ;;  %v1633_v27 = vrot.slane %v1632_v23, 4  ;;  %v1618_v28 = vsel %vm662_vm2, %v1604_v20, -inf  ;;  %v1586_v29 = vmul.f32 %v2293_v53, %v1563_v21 }
 0xb27   : > { %v1613_v31 = vmax.f32 %v1611_v47, %v1612_v22  ;;  %v1619_v33 = vrot.slane %v1618_v28, 4  ;;  %v1601_v30 = vadd.f32 %v3132_v58, %v1588_v24  ;;  %v1589_v49 = vmul.f32 %v2293_v53, %v1574_v57 }
 0xb28   : > { %v1628_v50 = vrot.slane %v1627_v26, 2  ;;  %v1634_v32 = vmax.f32 %v1632_v23, %v1633_v27  ;;  %v1599_v34 = vadd.f32 %v3132_v58, %v1586_v29  ;;  %v1566_v35 = vadd.f32 %v2284_v51, %v1565_v25 }
 0xb29   : > { %v1614_v36 = vrot.slane %v1613_v31, 2  ;;  %v1620_v37 = vmax.f32 %v1618_v28, %v1619_v33  ;;  %v1609_v38 = vmax.f32 %v1601_v30, 0.0  ;;  %v1602_v39 = vadd.f32 %v3132_v58, %v1589_v49 }
 0xb2a   : > { %v1629_v41 = vmax.f32 %v1627_v26, %v1628_v50  ;;  %v1635_v42 = vrot.slane %v1634_v32, 2  ;;  %v1607_v43 = vmax.f32 %v1599_v34, 0.0  ;;  %v1587_v44 = vmul.f32 %v2293_v53, %v1566_v35 }
 0xb2b   : > { %v1615_v45 = vmax.f32 %v1613_v31, %v1614_v36  ;;  %v1621_v46 = vrot.slane %v1620_v37, 2  ;;  %v1653_v48 = vsel %vm662_vm2, %v1609_v38, -inf  ;;  %v1610_v52 = vmax.f32 %v1602_v39, 0.0 }
 0xb2c   : > { %v1630_v55 = vrot.slane %v1629_v41, 1  ;;  %v1636_v56 = vmax.f32 %v1634_v32, %v1635_v42  ;;  %v1654_v59 = vrot.slane %v1653_v48, 4  ;;  %v1639_v51 = vsel %vm662_vm2, %v1607_v43, -inf }
 0xb2d   : > { %v1616_v60 = vrot.slane %v1615_v45, 1  ;;  %v1622_v61 = vmax.f32 %v1620_v37, %v1621_v46  ;;  %v1640_v62 = vrot.slane %v1639_v51, 4  ;;  %v1660_v63 = vsel %vm662_vm2, %v1610_v52, -inf }
 0xb2e   : > { %v1631_v1 = vmax.f32 %v1629_v41, %v1630_v55  ;;  %v1637_v2 = vrot.slane %v1636_v56, 1  ;;  %v1655_v53 = vmax.f32 %v1653_v48, %v1654_v59  ;;  %v1661_v3 = vrot.slane %v1660_v63, 4 }
 0xb2f   : > { %v1617_v4 = vmax.f32 %v1615_v45, %v1616_v60  ;;  %v1623_v5 = vrot.slane %v1622_v61, 1  ;;  %v1641_v6 = vmax.f32 %v1639_v51, %v1640_v62  ;;  %v1600_v7 = vadd.f32 %v3132_v58, %v1587_v44  ;;  %v2683_v45 = vld [vmem:[%s3279_s1 + $0x100] sm:$0xff]   ;;  %v2684_v62 = vld [vmem:[%s3279_s1 + $0x108] sm:$0xff]  }
 0xb30   : > { %v1686_v9 = vadd.f32 %v1670_v8, %v1631_v1  ;;  %v1638_v10 = vmax.f32 %v1636_v56, %v1637_v2  ;;  %v1656_v12 = vrot.slane %v1655_v53, 2  ;;  %v1662_v40 = vmax.f32 %v1660_v63, %v1661_v3  ;;  %1885 = vmatpush1.bf16.msra.mxu1 %v2683_v45 }
 0xb31   : > { %v1684_v14 = vadd.f32 %v3137_v0, %v1617_v4  ;;  %v1624_v15 = vmax.f32 %v1622_v61, %v1623_v5  ;;  %v1642_v16 = vrot.slane %v1641_v6, 2  ;;  %v1608_v17 = vmax.f32 %v1600_v7, 0.0 }
 0xb32   : > { %v1722_v19 = vrot.slane %v1686_v9, 7  ;;  %v1687_v47 = vadd.f32 %v1671_v11, %v1638_v10  ;;  %v1657_v20 = vmax.f32 %v1655_v53, %v1656_v12  ;;  %v1663_v21 = vrot.slane %v1662_v40, 2 }
 0xb33   : > { %v1685_v58 = vadd.f32 %v1669_v13, %v1624_v15  ;;  %v1643_v54 = vmax.f32 %v1641_v6, %v1642_v16  ;;  %v1646_v8 = vsel %vm662_vm2, %v1608_v17, -inf  ;;  %v1674_v22 = vrot.slane %v3137_v0, 6 }
 0xb34   : > { %v1725_v23 = vrot.slane %v1687_v47, 6  ;;  %v1664_v24 = vmax.f32 %v1662_v40, %v1663_v21  ;;  %v1647_v57 = vrot.slane %v1646_v8, 4  ;;  %v1699_v11 = vrot.slane %v1684_v14, 7 }
 0xb35   : > { %v1700_v25 = vrot.slane %v1685_v58, 6  ;;  %v1738_v26 = vrot.slane %v1685_v58, 7  ;;  %v1644_v27 = vrot.slane %v1643_v54, 1  ;;  %v1724_v28 = vsel %vm1723_vm3, %v1722_v19, %v1685_v58 }
 0xb36   : > { %v1658_v29 = vrot.slane %v1657_v20, 1  ;;  %v1648_v31 = vmax.f32 %v1646_v8, %v1647_v57  ;;  %v1726_v33 = vsel %vm1701_vm4, %v1725_v23, %v1724_v28  ;;  %v1665_v30 = vrot.slane %v1664_v24, 1  ;;  %v2685_v57 = vld [vmem:[%s3279_s1 + $0x110] sm:$0xff]  }
 0xb37   : > { %v1645_v13 = vmax.f32 %v1643_v54, %v1644_v27  ;;  %v1739_v49 = vsel %vm1723_vm3, %v1738_v26, %v1684_v14  ;;  %v1740_v50 = vrot.slane %v1686_v9, 6  ;;  %v1675_v34 = vrot.slane %v3137_v0, 7  ;;  %v2687_v26 = vld [vmem:[%s3279_s1 + $0x120] sm:$0xff]   ;;  %v2295_v27 = vld [vmem:[%s3280_s2 + $0xc] ss:$0 sm:$0xff] }
 0xb38   : > { %v1649_v32 = vrot.slane %v1648_v31, 2  ;;  %v1742_v35 = vrot.slane %v1687_v47, 5  ;;  %v1702_v36 = vsel %vm1701_vm4, %v1700_v25, %v1699_v11  ;;  %v1703_v39 = vrot.slane %v1686_v9, 5  ;;  %v2686_v25 = vld [vmem:[%s3279_s1 + $0x118] sm:$0xff]   ;;  %v2309_v11 = vld [vmem:[%s3280_s2 + $0xd] ss:$0 sm:$0xff] }
 0xb39   : > { %v1688_v37 = vadd.f32 %v1672_v18, %v1645_v13  ;;  %v1741_v38 = vsel %vm1701_vm4, %v1740_v50, %v1739_v49  ;;  %v1659_v41 = vmax.f32 %v1657_v20, %v1658_v29  ;;  %v1706_v44 = vrot.slane %v1687_v47, 4 }
 0xb3a   : > { %v1650_v42 = vmax.f32 %v1648_v31, %v1649_v32  ;;  %v1743_v43 = vsel %vm1704_vm5, %v1742_v35, %v1741_v38  ;;  %v1666_v48 = vmax.f32 %v1664_v24, %v1665_v30  ;;  %v1705_v55 = vsel %vm1704_vm5, %v1703_v39, %v1702_v36  ;;  %v2689_v36 = vld [vmem:[%s3279_s1 + $0x130] sm:$0xff]   ;;  %v2691_v38 = vld [vmem:[%s3279_s1 + $0x140] sm:$0xff]   ;;  %v2692_v39 = vld [vmem:[%s3279_s1 + $0x148] sm:$0xff]  }
 0xb3b   : > { %v1727_v46 = vrot.slane %v1688_v37, 5  ;;  %v1744_v52 = vrot.slane %v1688_v37, 4  ;;  %v1673_v18 = vrot.slane %v3137_v0, 5  ;;  %v1708_v59 = vsel %vm1707_vm6, %v1706_v44, %v1705_v55  ;;  %v2311_v44 = vld [vmem:[%s3280_s2 + $0xf] ss:$0 sm:$0xff] }
 0xb3c   : > { %v1651_v56 = vrot.slane %v1650_v42, 1  ;;  %v1709_v61 = vrot.slane %v1688_v37, 3  ;;  %v1690_v1 = vadd.f32 %v1674_v22, %v1659_v41  ;;  %v1691_v2 = vadd.f32 %v1675_v34, %v1666_v48  ;;  %v2688_v34 = vld [vmem:[%s3279_s1 + $0x128] sm:$0xff]   ;;  %v2690_v37 = vld [vmem:[%s3279_s1 + $0x138] sm:$0xff]   ;;  %v2693_v41 = vld [vmem:[%s3279_s1 + $0x150] sm:$0xff]  }
 0xb3d   : > { %v1745_v51 = vsel %vm1707_vm6, %v1744_v52, %v1743_v43  ;;  %v1728_v60 = vsel %vm1704_vm5, %v1727_v46, %v1726_v33  ;;  %v2741_v3 = vmov 0.0   ;;  %v2310_v33 = vld [vmem:[%s3280_s2 + $0xe] ss:$0 sm:$0xff]  ;;  %v2695_v43 = vld [vmem:[%s3279_s1 + $0x160] sm:$0xff]   ;;  %v2317_v46 = vld [vmem:[%s3280_s2 + $0x10] ss:$0 sm:$0xff] }
 0xb3e   : > { %v1652_v63 = vmax.f32 %v1650_v42, %v1651_v56  ;;  %v1711_v53 = vsel %vm1710_vm7, %v1709_v61, %v1708_v59  ;;  %2576 = vmatprep.subr.bf16.mxu0 %v2741_v3  ;;  %v1731_v7 = vrot.slane %v1690_v1, 3  ;;  %v1733_v9 = vrot.slane %v1691_v2, 2  ;;  %2584 = vmatprep.mubr.msk.bf16.mxu0 %vm2742_vm12, %v2741_v3  ;;  %v2694_v42 = vld [vmem:[%s3279_s1 + $0x158] sm:$0xff]   ;;  %v2318_v55 = vld [vmem:[%s3280_s2 + $0x11] ss:$0 sm:$0xff] }
 0xb3f   : > { %2577 = vmatpush3.bf16.msra.mxu0 %v2684_v62  ;;  %v1748_v10 = vrot.slane %v1690_v1, 2  ;;  %v1715_v12 = vrot.slane %v1690_v1, 1  ;;  %v1750_v14 = vrot.slane %v1691_v2, 1 }
 0xb40   : > { %v1689_v0 = vadd.f32 %v1673_v18, %v1652_v63  ;;  %2578 = vmatprep.subr.bf16.mxu0 %v2741_v3 }
 0xb42   : > { %v1729_v4 = vrot.slane %v1689_v0, 4  ;;  %v1746_v5 = vrot.slane %v1689_v0, 3  ;;  %v1712_v6 = vrot.slane %v1689_v0, 2  ;;  %v2121_v0 = vlaneseq }
 0xb43   : > { %2579 = vmatpush3.bf16.msra.mxu0 %v2685_v57 }
 0xb44   : > { %v1747_v40 = vsel %vm1710_vm7, %v1746_v5, %v1745_v51  ;;  %v1730_v15 = vsel %vm1707_vm6, %v1729_v4, %v1728_v60  ;;  %v1714_v16 = vsel %vm1713_vm8, %v1712_v6, %v1711_v53  ;;  %2580 = vmatprep.subr.bf16.mxu0 %v2741_v3  ;;  %v2122_v4 = vshrl.u32 %v2121_v0, 7  ;;  %v2032_v5 = vld [vmem:[%s3280_s2 + $0x12] sm:$0x1] }
 0xb45   : > { %v1749_v17 = vsel %vm1713_vm8, %v1748_v10, %v1747_v40  ;;  %v1732_v19 = vsel %vm1710_vm7, %v1731_v7, %v1730_v15  ;;  %v1717_v47 = vsel %vm1716_vm9, %v1715_v12, %v1714_v16 }
 0xb46   : > { %v1751_v20 = vsel %vm1716_vm9, %v1750_v14, %v1749_v17  ;;  %v1734_v21 = vsel %vm1713_vm8, %v1733_v9, %v1732_v19  ;;  %v1720_v22 = vsel %vm1719_vm11, 0.0, %v1717_v47  ;;  %v2123_v6 = vsub.s32 0, %v2122_v4 }
 0xb47   : > { %1752 = vrot.lane.b32.xlu0 %v1751_v20, %s2738_s5  ;;  %v1737_v58 = vsel %vm1736_vm10, %v1734_v21, 0.0  ;;  %2581 = vmatpush3.bf16.msra.mxu0 %v2686_v25 }
 0xb48   : > { %v1757_v54 = vpack.c.bf16 %v1737_v58, %v1737_v58  ;;  %2582 = vmatprep.subr.bf16.mxu0 %v2741_v3 }
 0xb4a   : > { %2308 = vmatprep.mubr.msk.bf16.mxu1 %vm662_vm2, %v1757_v54 }
 0xb4b   : > { %2583 = vmatpush3.bf16.msra.mxu0 %v2687_v26 }
 0xb4c   : > { %2588 = vmatprep.subr.bf16.mxu0 %v2741_v3 }
 0xbb9   : > { %v1753_v8 = vpop.permute.xlu0 %1752 }
 0xbba   : > { %v1755_v23 = vsel %vm662_vm2, %v1720_v22, %v1753_v8 }
 0xbbb   : > { %v1756_v24 = vpack.c.bf16 %v1755_v23, %v1755_v23 }
 0xbbd   : > { %1895 = vmatmul.mubr.bf16.vlgmr.msra.gmra.mrb[40].mxu1 %v1756_v24 }
 0xc90   : > { %v1896_v28 = vpop.f32.mrb[40].mxu1 }
 0xc91   : > { %v1897_v29 = vadd.f32 %v2295_v27, %v1896_v28  ;;  %v1898_v31 = vpop.f32.mrb[41].mxu1 }
 0xc92   : > { %v1899_v13 = vpop.f32.mrb[42].mxu1 }
 0xc93   : > { %v1907_v30 = vmul.f32 %v2309_v11, %v1897_v29  ;;  %v1900_v49 = vpop.f32.mrb[43].mxu1 }
 0xc95   : > { %v1913_v50 = vadd.f32 %v2310_v33, %v1907_v30 }
 0xc97   : > { %v1914_v32 = vmax.f32 %v1913_v50, 0.0 }
 0xc99   : > { %v1915_v35 = vpack.c.bf16 %v1914_v32, %v1914_v32 }
 0xc9b   : > { %2585 = vmatmul.mubr.msk.bf16.vlgmr.msra.gmra.mrb[40].mxu0 %vm662_vm2, %v1915_v35 }
 0xc9c   : > { %2589 = vmatpush3.bf16.msra.mxu0 %v2688_v34  ;;  %2604 = vmatprep.mubr.msk.bf16.mxu0 %vm2742_vm12, %v2741_v3 }
 0xc9d   : > { %2590 = vmatprep.subr.bf16.mxu0 %v2741_v3 }
 0xca0   : > { %2591 = vmatpush3.bf16.msra.mxu0 %v2689_v36 }
 0xca1   : > { %2592 = vmatprep.subr.bf16.mxu0 %v2741_v3 }
 0xca4   : > { %2593 = vmatpush3.bf16.msra.mxu0 %v2690_v37 }
 0xca5   : > { %2594 = vmatprep.subr.bf16.mxu0 %v2741_v3 }
 0xca8   : > { %2595 = vmatpush3.bf16.msra.mxu0 %v2691_v38 }
 0xca9   : > { %2596 = vmatprep.subr.bf16.mxu0 %v2741_v3 }
 0xcac   : > { %2597 = vmatpush3.bf16.msra.mxu0 %v2692_v39 }
 0xcad   : > { %2598 = vmatprep.subr.bf16.mxu0 %v2741_v3 }
 0xcb0   : > { %2599 = vmatpush3.bf16.msra.mxu0 %v2693_v41 }
 0xcb1   : > { %2600 = vmatprep.subr.bf16.mxu0 %v2741_v3 }
 0xcb4   : > { %2601 = vmatpush3.bf16.msra.mxu0 %v2694_v42 }
 0xcb5   : > { %2602 = vmatprep.subr.bf16.mxu0 %v2741_v3 }
 0xcb8   : > { %2603 = vmatpush3.bf16.msra.mxu0 %v2695_v43 }
 0xd6e   : > { %v1990_v45 = vpop.f32.mrb[40].mxu0 }
 0xd6f   : > { %v1991_v48 = vadd.f32 %v2311_v44, %v1990_v45  ;;  %v2586_v52 = vpop.f32.mrb[41].mxu0 }
 0xd70   : > { %v1993_v56 = vpop.f32.mrb[42].mxu0 }
 0xd71   : > { %v2001_v18 = vmul.f32 %v2317_v46, %v1991_v48  ;;  %v2587_v59 = vpop.f32.mrb[43].mxu0 }
 0xd73   : > { %v2007_v51 = vadd.f32 %v2318_v55, %v2001_v18 }
 0xd75   : > { %v2008_v60 = vmax.f32 %v2007_v51, 0.0 }
 0xd77   : > { %v2009_v61 = vrot.slane %v2008_v60, 4 }
 0xd79   : > { %v2010_v62 = vmax.f32 %v2008_v60, %v2009_v61 }
 0xd7b   : > { %v2011_v63 = vrot.slane %v2010_v62, 2 }
 0xd7d   : > { %v2012_v1 = vmax.f32 %v2010_v62, %v2011_v63 }
 0xd7f   : > { %v2013_v2 = vrot.slane %v2012_v1, 1 }
 0xd81   : > { %v2014_v53 = vmax.f32 %v2012_v1, %v2013_v2 }
 0xd83   : > { %v2015_v3 = vpack.c.bf16 %v2014_v53, %v2014_v53 }
 0xd85   : > { %2605 = vmatmul.mubr.bf16.vlgmr.msra.gmra.mrb[44].mxu0 %v2015_v3 }
 0xe58   : > { %v2115_v7 = vpop.f32.mrb[44].mxu0 }
 0xe59   : > { %v2116_v9 = vadd.f32 %v2115_v7, %v2032_v5  ;;  %v2606_v10 = vpop.f32.mrb[45].mxu0 }
 0xe5a   : > { %v2118_v12 = vpop.f32.mrb[46].mxu0 }
 0xe5b   : > { %v2124_v40 = vrot.slane %v2116_v9, %v2123_v6  ;;  %v2607_v14 = vpop.f32.mrb[47].mxu0 }
 0xe5d   : > { %2125 = vst [vmem:[%s203_s29] sm:$0xff] %v2124_v40 }
 0xe5e PF: > { %s15_s15 = sadd.s32 1, %s2734_s15  }
 0xe5f   : > { %p12_p4 = scmp.ge.s32.totalorder %s15_s15, 4  }
 0xe61   :  { %14 = sbr.rel (!%p12_p4) target bundleno = 1 (0x1), region = 74 }

</bundles_post_ra>
